<compile_context>
chip_gen: v5e
topology: v5e:2x2
jax: 0.10.0
libtpu: 0.0.40
codegen_flags: <defaults>
</compile_context>

<pallas_src>
import jax
import jax.numpy as jnp
from jax.experimental import pallas as pl
from jax.experimental.pallas import tpu as pltpu

E = 100           # embedding_size (PyTorch module)
EP = 128          # embedding dim zero-padded to a full lane tile
H = 128           # hidden_size
F = H // 2        # fc_size
NUM_CLASSES = 2


def siamese_lstm_kernel(x_ref, wih_ref, whh_ref, vecs_ref, head_ref, out_ref):
    """Fused left/right LSTM recurrence + classifier, fully VMEM-resident.

    x_ref    : (2T, EP) bf16, row-interleaved [l_0, r_0, l_1, r_1, ...]
    wih_ref  : (EP, 4H) bf16   whh_ref : (H, 4H) bf16
    vecs_ref : (8, 4H) f32  -- row0 = b(ih+hh); rows1-2 = h0 (l,r) in cols 0:H;
                               rows3-4 = c0; row5 = b1 (cols 0:F); row6 = b2.
    head_ref : (H+F, F) f32 -- rows 0:H = w1; rows H:H+F = w2 (cols 0:2).
    """
    T = x_ref.shape[0] // 2
    whh = whh_ref[...]                                            # (H, 4H) bf16

    b = vecs_ref[0:1, :]                                          # (1, 4H)
    h = vecs_ref[1:3, 0:H]                                        # (2, H) f32
    c = vecs_ref[3:5, 0:H]                                        # (2, H) f32
    b1 = vecs_ref[5:6, 0:F]                                       # (1, F)
    b2 = vecs_ref[6:7, 0:NUM_CLASSES]                             # (1, 2)

    # Hoisted input projection + pre-summed bias: one MXU call for every step
    # of both sides (bf16 operands, f32 accumulation).
    x_proj = (jnp.dot(x_ref[...], wih_ref[...],
                      preferred_element_type=jnp.float32) + b)    # (2T, 4H) f32

    # Fully-unrolled fused recurrence; only h @ W_hh stays on the serial chain.
    for t in range(T):
        g = (jnp.dot(h.astype(jnp.bfloat16), whh,
                     preferred_element_type=jnp.float32)
             + x_proj[2 * t:2 * t + 2, :])                        # (2, 4H)
        i_f = jax.nn.sigmoid(g[:, 0:2 * H])                       # fused i|f gates
        i_g = i_f[:, 0:H]
        f_g = i_f[:, H:2 * H]
        g_g = jnp.tanh(g[:, 2 * H:3 * H])
        o_g = jax.nn.sigmoid(g[:, 3 * H:4 * H])
        c = f_g * c + i_g * g_g
        h = o_g * jnp.tanh(c)

    # Classifier head (runs once, off the recurrent chain) -- kept in f32.
    d = jnp.abs(h[0:1, :] - h[1:2, :])                            # |hl - hr|, (1, H)
    w1 = head_ref[0:H, :]                                         # (H, F)
    w2 = head_ref[H:H + F, 0:NUM_CLASSES]                         # (F, 2)
    z1 = jnp.dot(d, w1, preferred_element_type=jnp.float32) + b1
    logits = jnp.dot(z1, w2, preferred_element_type=jnp.float32) + b2
    out_ref[...] = logits                                         # (1, 2)


def siamese_forward(xl, xr, h0l, c0l, h0r, c0r, params):
    T = xl.shape[0]
    assert xr.shape[0] == T, "fused recurrence expects equal-length sides"
    # Interleave rows: x[2t] = left step t, x[2t+1] = right step t; zero-pad
    # the embedding dim to 128 lanes (exactly equivalent since pad cols are 0).
    x = jnp.stack([xl, xr], axis=1).reshape(2 * T, E)
    x = jnp.pad(x, ((0, 0), (0, EP - E))).astype(jnp.bfloat16)          # (2T, EP)
    wih = jnp.pad(params["wih"], ((0, EP - E), (0, 0))).astype(jnp.bfloat16)
    whh = params["whh"].astype(jnp.bfloat16)

    # Pack the tiny arrays into two VMEM inputs (fewer DMA descriptors).
    vecs = jnp.zeros((8, 4 * H), jnp.float32)
    vecs = vecs.at[0, :].set(params["b"][0])
    vecs = vecs.at[1, 0:H].set(h0l[0])
    vecs = vecs.at[2, 0:H].set(h0r[0])
    vecs = vecs.at[3, 0:H].set(c0l[0])
    vecs = vecs.at[4, 0:H].set(c0r[0])
    vecs = vecs.at[5, 0:F].set(params["b1"][0])
    vecs = vecs.at[6, 0:NUM_CLASSES].set(params["b2"][0])

    head = jnp.zeros((H + F, F), jnp.float32)
    head = head.at[0:H, :].set(params["w1"])
    head = head.at[H:H + F, 0:NUM_CLASSES].set(params["w2"])

    vmem = pl.BlockSpec(memory_space=pltpu.MemorySpace.VMEM)
    out = pl.pallas_call(
        siamese_lstm_kernel,
        out_shape=jax.ShapeDtypeStruct((1, NUM_CLASSES), jnp.float32),
        in_specs=[vmem] * 5,
        out_specs=vmem,
    )(x, wih, whh, vecs, head)
    # PyTorch returns (1, 1, 2) because vl/vr are (1, 1, H); match that shape.
    return out.reshape(1, 1, NUM_CLASSES)


# ----------------------------- pure-JAX references -----------------------------
def _lstm_ref(x, h, c, wih, whh, b, mm_dtype):
    for t in range(x.shape[0]):
        g = (jnp.dot(x[t:t + 1].astype(mm_dtype), wih.astype(mm_dtype),
                     preferred_element_type=jnp.float32)
             + jnp.dot(h.astype(mm_dtype), whh.astype(mm_dtype),
                       preferred_element_type=jnp.float32)
             + b)
        i = jax.nn.sigmoid(g[:, 0:H])
        f = jax.nn.sigmoid(g[:, H:2 * H])
        gg = jnp.tanh(g[:, 2 * H:3 * H])
        o = jax.nn.sigmoid(g[:, 3 * H:4 * H])
        c = f * c + i * gg
        h = o * jnp.tanh(c)
    return h


def _ref_forward(xl, xr, h0l, c0l, h0r, c0r, p, mm_dtype=jnp.float32):
    hl = _lstm_ref(xl, h0l, c0l, p["wih"], p["whh"], p["b"], mm_dtype)
    hr = _lstm_ref(xr, h0r, c0r, p["wih"], p["whh"], p["b"], mm_dtype)
    d = jnp.abs(hl - hr)
    return ((d @ p["w1"] + p["b1"]) @ p["w2"] + p["b2"]).reshape(1, 1, NUM_CLASSES)


if __name__ == "__main__":
    key = jax.random.PRNGKey(0)
    ks = jax.random.split(key, 16)

    # frozen embedding tables (config['word_vocab'], config['topic_vocab'])
    word_vocab_size, topic_vocab_size = 50, 10
    word_vocab = jax.random.normal(ks[0], (word_vocab_size, E), jnp.float32)
    topic_vocab = jax.random.normal(ks[1], (topic_vocab_size, E), jnp.float32)

    # LSTM parameters (PyTorch gate order i,f,g,o), stored transposed.
    scale = 1.0 / jnp.sqrt(jnp.float32(H))
    params = {
        "wih": jax.random.uniform(ks[2], (E, 4 * H), jnp.float32, -scale, scale),
        "whh": jax.random.uniform(ks[3], (H, 4 * H), jnp.float32, -scale, scale),
        "b": (jax.random.uniform(ks[4], (1, 4 * H), jnp.float32, -scale, scale)
              + jax.random.uniform(ks[5], (1, 4 * H), jnp.float32, -scale, scale)),
        "w1": jax.random.uniform(ks[6], (H, F), jnp.float32, -scale, scale),
        "b1": jax.random.uniform(ks[7], (1, F), jnp.float32, -scale, scale),
        "w2": jax.random.uniform(ks[8], (F, NUM_CLASSES), jnp.float32, -scale, scale),
        "b2": jax.random.uniform(ks[9], (1, NUM_CLASSES), jnp.float32, -scale, scale),
    }

    # token sequences: config['use_words'] and config['use_topics'] both True,
    # so each side's LSTM sees word tokens followed by topic tokens.
    lw = jax.random.randint(ks[10], (5,), 0, word_vocab_size)
    rw = jax.random.randint(ks[11], (5,), 0, word_vocab_size)
    lt = jax.random.randint(ks[12], (3,), 0, topic_vocab_size)
    rt = jax.random.randint(ks[13], (3,), 0, topic_vocab_size)

    # glue: frozen-embedding lookup + concat -> (T, E) time-major sequences
    xl = jnp.concatenate([jnp.take(word_vocab, lw, axis=0),
                          jnp.take(topic_vocab, lt, axis=0)], axis=0)
    xr = jnp.concatenate([jnp.take(word_vocab, rw, axis=0),
                          jnp.take(topic_vocab, rt, axis=0)], axis=0)

    # Encoder.initialize(): random initial hidden/cell (num_layers=1, batch=1, H)
    h0l = jax.random.normal(ks[14], (1, H), jnp.float32)
    c0l = jax.random.normal(ks[15], (1, H), jnp.float32)
    k2 = jax.random.split(ks[14], 2)
    h0r = jax.random.normal(k2[0], (1, H), jnp.float32)
    c0r = jax.random.normal(k2[1], (1, H), jnp.float32)

    out = siamese_forward(xl, xr, h0l, c0l, h0r, c0r, params)
    out = jax.block_until_ready(out)
    assert out.shape == (1, 1, NUM_CLASSES)

    # Kernel correctness: compare against a reference using the same bf16
    # matmul-operand / f32-accumulate recipe (tight tolerance) ...
    ref_bf16 = _ref_forward(xl, xr, h0l, c0l, h0r, c0r, params, jnp.bfloat16)
    assert jnp.allclose(out, ref_bf16, rtol=2e-3, atol=2e-3), (out, ref_bf16)
    # ... and numerical fidelity to the original full-f32 PyTorch semantics
    # (looser tolerance: bf16 MXU operands introduce ~1e-3-level error).
    ref_f32 = _ref_forward(xl, xr, h0l, c0l, h0r, c0r, params, jnp.float32)
    assert jnp.allclose(out, ref_f32, rtol=3e-2, atol=3e-2), (out, ref_f32)

    print("KERNEL_OK")
</pallas_src>

<mosaic_0001>
module attributes {stable_mosaic.version = 11 : i64} {
  func.func @siamese_lstm_kernel(%arg0: memref<16x128xbf16, #tpu.memory_space<vmem>>, %arg1: memref<128x512xbf16, #tpu.memory_space<vmem>>, %arg2: memref<128x512xbf16, #tpu.memory_space<vmem>>, %arg3: memref<8x512xf32, #tpu.memory_space<vmem>>, %arg4: memref<192x64xf32, #tpu.memory_space<vmem>>, %arg5: memref<1x2xf32, #tpu.memory_space<vmem>>) attributes {dimension_semantics = [], scalar_prefetch = 0 : i64, scratch_operands = 0 : i64, tpu.core_type = #tpu.core_type<tc>} {
    %c0 = arith.constant 0 : index
    %c0_0 = arith.constant 0 : index
    %0 = vector.load %arg2[%c0, %c0_0] : memref<128x512xbf16, #tpu.memory_space<vmem>>, vector<128x512xbf16>
    %c0_1 = arith.constant 0 : index
    %c0_2 = arith.constant 0 : index
    %1 = vector.load %arg3[%c0_1, %c0_2] : memref<8x512xf32, #tpu.memory_space<vmem>>, vector<1x512xf32>
    %c1 = arith.constant 1 : index
    %c0_3 = arith.constant 0 : index
    %2 = vector.load %arg3[%c1, %c0_3] : memref<8x512xf32, #tpu.memory_space<vmem>>, vector<2x128xf32>
    %c3 = arith.constant 3 : index
    %c0_4 = arith.constant 0 : index
    %3 = vector.load %arg3[%c3, %c0_4] : memref<8x512xf32, #tpu.memory_space<vmem>>, vector<2x128xf32>
    %c5 = arith.constant 5 : index
    %c0_5 = arith.constant 0 : index
    %4 = vector.load %arg3[%c5, %c0_5] : memref<8x512xf32, #tpu.memory_space<vmem>>, vector<1x64xf32>
    %c6 = arith.constant 6 : index
    %c0_6 = arith.constant 0 : index
    %5 = vector.load %arg3[%c6, %c0_6] : memref<8x512xf32, #tpu.memory_space<vmem>>, vector<1x2xf32>
    %c0_7 = arith.constant 0 : index
    %c0_8 = arith.constant 0 : index
    %6 = vector.load %arg0[%c0_7, %c0_8] : memref<16x128xbf16, #tpu.memory_space<vmem>>, vector<16x128xbf16>
    %c0_9 = arith.constant 0 : index
    %c0_10 = arith.constant 0 : index
    %7 = vector.load %arg1[%c0_9, %c0_10] : memref<128x512xbf16, #tpu.memory_space<vmem>>, vector<128x512xbf16>
    %cst = arith.constant dense<0.000000e+00> : vector<16x512xf32>
    %8 = tpu.matmul %6, %7, %cst {dimension_numbers = #tpu.dot_dimension_numbers<[1], [0], [0], [1], [0, 0, 1, 1], [], []>} : vector<16x128xbf16>, vector<128x512xbf16>, vector<16x512xf32> -> vector<16x512xf32>
    %9 = vector.broadcast %1 : vector<1x512xf32> to vector<16x512xf32>
    %10 = arith.addf %8, %9 : vector<16x512xf32>
    %11 = arith.truncf %2 : vector<2x128xf32> to vector<2x128xbf16>
    %cst_11 = arith.constant dense<0.000000e+00> : vector<2x512xf32>
    %12 = tpu.matmul %11, %0, %cst_11 {dimension_numbers = #tpu.dot_dimension_numbers<[1], [0], [0], [1], [0, 0, 1, 1], [], []>} : vector<2x128xbf16>, vector<128x512xbf16>, vector<2x512xf32> -> vector<2x512xf32>
    %13 = vector.extract_strided_slice %10 {offsets = [0, 0], sizes = [2, 512], strides = [1, 1]} : vector<16x512xf32> to vector<2x512xf32>
    %14 = arith.addf %12, %13 : vector<2x512xf32>
    %15 = vector.extract_strided_slice %14 {offsets = [0, 0], sizes = [2, 256], strides = [1, 1]} : vector<2x512xf32> to vector<2x256xf32>
    %16 = arith.negf %15 : vector<2x256xf32>
    %17 = math.exp %16 : vector<2x256xf32>
    %cst_12 = arith.constant 1.000000e+00 : f32
    %18 = vector.broadcast %cst_12 : f32 to vector<2x256xf32>
    %19 = arith.addf %18, %17 : vector<2x256xf32>
    %20 = arith.divf %18, %19 : vector<2x256xf32>
    %21 = vector.extract_strided_slice %20 {offsets = [0, 0], sizes = [2, 128], strides = [1, 1]} : vector<2x256xf32> to vector<2x128xf32>
    %22 = vector.extract_strided_slice %20 {offsets = [0, 128], sizes = [2, 128], strides = [1, 1]} : vector<2x256xf32> to vector<2x128xf32>
    %23 = vector.extract_strided_slice %14 {offsets = [0, 256], sizes = [2, 128], strides = [1, 1]} : vector<2x512xf32> to vector<2x128xf32>
    %24 = math.tanh %23 : vector<2x128xf32>
    %25 = vector.extract_strided_slice %14 {offsets = [0, 384], sizes = [2, 128], strides = [1, 1]} : vector<2x512xf32> to vector<2x128xf32>
    %26 = arith.negf %25 : vector<2x128xf32>
    %27 = math.exp %26 : vector<2x128xf32>
    %cst_13 = arith.constant 1.000000e+00 : f32
    %28 = vector.broadcast %cst_13 : f32 to vector<2x128xf32>
    %29 = arith.addf %28, %27 : vector<2x128xf32>
    %30 = arith.divf %28, %29 : vector<2x128xf32>
    %31 = arith.mulf %22, %3 : vector<2x128xf32>
    %32 = arith.mulf %21, %24 : vector<2x128xf32>
    %33 = arith.addf %31, %32 : vector<2x128xf32>
    %34 = math.tanh %33 : vector<2x128xf32>
    %35 = arith.mulf %30, %34 : vector<2x128xf32>
    %36 = arith.truncf %35 : vector<2x128xf32> to vector<2x128xbf16>
    %cst_14 = arith.constant dense<0.000000e+00> : vector<2x512xf32>
    %37 = tpu.matmul %36, %0, %cst_14 {dimension_numbers = #tpu.dot_dimension_numbers<[1], [0], [0], [1], [0, 0, 1, 1], [], []>} : vector<2x128xbf16>, vector<128x512xbf16>, vector<2x512xf32> -> vector<2x512xf32>
    %38 = vector.extract_strided_slice %10 {offsets = [2, 0], sizes = [2, 512], strides = [1, 1]} : vector<16x512xf32> to vector<2x512xf32>
    %39 = arith.addf %37, %38 : vector<2x512xf32>
    %40 = vector.extract_strided_slice %39 {offsets = [0, 0], sizes = [2, 256], strides = [1, 1]} : vector<2x512xf32> to vector<2x256xf32>
    %41 = arith.negf %40 : vector<2x256xf32>
    %42 = math.exp %41 : vector<2x256xf32>
    %cst_15 = arith.constant 1.000000e+00 : f32
    %43 = vector.broadcast %cst_15 : f32 to vector<2x256xf32>
    %44 = arith.addf %43, %42 : vector<2x256xf32>
    %45 = arith.divf %43, %44 : vector<2x256xf32>
    %46 = vector.extract_strided_slice %45 {offsets = [0, 0], sizes = [2, 128], strides = [1, 1]} : vector<2x256xf32> to vector<2x128xf32>
    %47 = vector.extract_strided_slice %45 {offsets = [0, 128], sizes = [2, 128], strides = [1, 1]} : vector<2x256xf32> to vector<2x128xf32>
    %48 = vector.extract_strided_slice %39 {offsets = [0, 256], sizes = [2, 128], strides = [1, 1]} : vector<2x512xf32> to vector<2x128xf32>
    %49 = math.tanh %48 : vector<2x128xf32>
    %50 = vector.extract_strided_slice %39 {offsets = [0, 384], sizes = [2, 128], strides = [1, 1]} : vector<2x512xf32> to vector<2x128xf32>
    %51 = arith.negf %50 : vector<2x128xf32>
    %52 = math.exp %51 : vector<2x128xf32>
    %cst_16 = arith.constant 1.000000e+00 : f32
    %53 = vector.broadcast %cst_16 : f32 to vector<2x128xf32>
    %54 = arith.addf %53, %52 : vector<2x128xf32>
    %55 = arith.divf %53, %54 : vector<2x128xf32>
    %56 = arith.mulf %47, %33 : vector<2x128xf32>
    %57 = arith.mulf %46, %49 : vector<2x128xf32>
    %58 = arith.addf %56, %57 : vector<2x128xf32>
    %59 = math.tanh %58 : vector<2x128xf32>
    %60 = arith.mulf %55, %59 : vector<2x128xf32>
    %61 = arith.truncf %60 : vector<2x128xf32> to vector<2x128xbf16>
    %cst_17 = arith.constant dense<0.000000e+00> : vector<2x512xf32>
    %62 = tpu.matmul %61, %0, %cst_17 {dimension_numbers = #tpu.dot_dimension_numbers<[1], [0], [0], [1], [0, 0, 1, 1], [], []>} : vector<2x128xbf16>, vector<128x512xbf16>, vector<2x512xf32> -> vector<2x512xf32>
    %63 = vector.extract_strided_slice %10 {offsets = [4, 0], sizes = [2, 512], strides = [1, 1]} : vector<16x512xf32> to vector<2x512xf32>
    %64 = arith.addf %62, %63 : vector<2x512xf32>
    %65 = vector.extract_strided_slice %64 {offsets = [0, 0], sizes = [2, 256], strides = [1, 1]} : vector<2x512xf32> to vector<2x256xf32>
    %66 = arith.negf %65 : vector<2x256xf32>
    %67 = math.exp %66 : vector<2x256xf32>
    %cst_18 = arith.constant 1.000000e+00 : f32
    %68 = vector.broadcast %cst_18 : f32 to vector<2x256xf32>
    %69 = arith.addf %68, %67 : vector<2x256xf32>
    %70 = arith.divf %68, %69 : vector<2x256xf32>
    %71 = vector.extract_strided_slice %70 {offsets = [0, 0], sizes = [2, 128], strides = [1, 1]} : vector<2x256xf32> to vector<2x128xf32>
    %72 = vector.extract_strided_slice %70 {offsets = [0, 128], sizes = [2, 128], strides = [1, 1]} : vector<2x256xf32> to vector<2x128xf32>
    %73 = vector.extract_strided_slice %64 {offsets = [0, 256], sizes = [2, 128], strides = [1, 1]} : vector<2x512xf32> to vector<2x128xf32>
    %74 = math.tanh %73 : vector<2x128xf32>
    %75 = vector.extract_strided_slice %64 {offsets = [0, 384], sizes = [2, 128], strides = [1, 1]} : vector<2x512xf32> to vector<2x128xf32>
    %76 = arith.negf %75 : vector<2x128xf32>
    %77 = math.exp %76 : vector<2x128xf32>
    %cst_19 = arith.constant 1.000000e+00 : f32
    %78 = vector.broadcast %cst_19 : f32 to vector<2x128xf32>
    %79 = arith.addf %78, %77 : vector<2x128xf32>
    %80 = arith.divf %78, %79 : vector<2x128xf32>
    %81 = arith.mulf %72, %58 : vector<2x128xf32>
    %82 = arith.mulf %71, %74 : vector<2x128xf32>
    %83 = arith.addf %81, %82 : vector<2x128xf32>
    %84 = math.tanh %83 : vector<2x128xf32>
    %85 = arith.mulf %80, %84 : vector<2x128xf32>
    %86 = arith.truncf %85 : vector<2x128xf32> to vector<2x128xbf16>
    %cst_20 = arith.constant dense<0.000000e+00> : vector<2x512xf32>
    %87 = tpu.matmul %86, %0, %cst_20 {dimension_numbers = #tpu.dot_dimension_numbers<[1], [0], [0], [1], [0, 0, 1, 1], [], []>} : vector<2x128xbf16>, vector<128x512xbf16>, vector<2x512xf32> -> vector<2x512xf32>
    %88 = vector.extract_strided_slice %10 {offsets = [6, 0], sizes = [2, 512], strides = [1, 1]} : vector<16x512xf32> to vector<2x512xf32>
    %89 = arith.addf %87, %88 : vector<2x512xf32>
    %90 = vector.extract_strided_slice %89 {offsets = [0, 0], sizes = [2, 256], strides = [1, 1]} : vector<2x512xf32> to vector<2x256xf32>
    %91 = arith.negf %90 : vector<2x256xf32>
    %92 = math.exp %91 : vector<2x256xf32>
    %cst_21 = arith.constant 1.000000e+00 : f32
    %93 = vector.broadcast %cst_21 : f32 to vector<2x256xf32>
    %94 = arith.addf %93, %92 : vector<2x256xf32>
    %95 = arith.divf %93, %94 : vector<2x256xf32>
    %96 = vector.extract_strided_slice %95 {offsets = [0, 0], sizes = [2, 128], strides = [1, 1]} : vector<2x256xf32> to vector<2x128xf32>
    %97 = vector.extract_strided_slice %95 {offsets = [0, 128], sizes = [2, 128], strides = [1, 1]} : vector<2x256xf32> to vector<2x128xf32>
    %98 = vector.extract_strided_slice %89 {offsets = [0, 256], sizes = [2, 128], strides = [1, 1]} : vector<2x512xf32> to vector<2x128xf32>
    %99 = math.tanh %98 : vector<2x128xf32>
    %100 = vector.extract_strided_slice %89 {offsets = [0, 384], sizes = [2, 128], strides = [1, 1]} : vector<2x512xf32> to vector<2x128xf32>
    %101 = arith.negf %100 : vector<2x128xf32>
    %102 = math.exp %101 : vector<2x128xf32>
    %cst_22 = arith.constant 1.000000e+00 : f32
    %103 = vector.broadcast %cst_22 : f32 to vector<2x128xf32>
    %104 = arith.addf %103, %102 : vector<2x128xf32>
    %105 = arith.divf %103, %104 : vector<2x128xf32>
    %106 = arith.mulf %97, %83 : vector<2x128xf32>
    %107 = arith.mulf %96, %99 : vector<2x128xf32>
    %108 = arith.addf %106, %107 : vector<2x128xf32>
    %109 = math.tanh %108 : vector<2x128xf32>
    %110 = arith.mulf %105, %109 : vector<2x128xf32>
    %111 = arith.truncf %110 : vector<2x128xf32> to vector<2x128xbf16>
    %cst_23 = arith.constant dense<0.000000e+00> : vector<2x512xf32>
    %112 = tpu.matmul %111, %0, %cst_23 {dimension_numbers = #tpu.dot_dimension_numbers<[1], [0], [0], [1], [0, 0, 1, 1], [], []>} : vector<2x128xbf16>, vector<128x512xbf16>, vector<2x512xf32> -> vector<2x512xf32>
    %113 = vector.extract_strided_slice %10 {offsets = [8, 0], sizes = [2, 512], strides = [1, 1]} : vector<16x512xf32> to vector<2x512xf32>
    %114 = arith.addf %112, %113 : vector<2x512xf32>
    %115 = vector.extract_strided_slice %114 {offsets = [0, 0], sizes = [2, 256], strides = [1, 1]} : vector<2x512xf32> to vector<2x256xf32>
    %116 = arith.negf %115 : vector<2x256xf32>
    %117 = math.exp %116 : vector<2x256xf32>
    %cst_24 = arith.constant 1.000000e+00 : f32
    %118 = vector.broadcast %cst_24 : f32 to vector<2x256xf32>
    %119 = arith.addf %118, %117 : vector<2x256xf32>
    %120 = arith.divf %118, %119 : vector<2x256xf32>
    %121 = vector.extract_strided_slice %120 {offsets = [0, 0], sizes = [2, 128], strides = [1, 1]} : vector<2x256xf32> to vector<2x128xf32>
    %122 = vector.extract_strided_slice %120 {offsets = [0, 128], sizes = [2, 128], strides = [1, 1]} : vector<2x256xf32> to vector<2x128xf32>
    %123 = vector.extract_strided_slice %114 {offsets = [0, 256], sizes = [2, 128], strides = [1, 1]} : vector<2x512xf32> to vector<2x128xf32>
    %124 = math.tanh %123 : vector<2x128xf32>
    %125 = vector.extract_strided_slice %114 {offsets = [0, 384], sizes = [2, 128], strides = [1, 1]} : vector<2x512xf32> to vector<2x128xf32>
    %126 = arith.negf %125 : vector<2x128xf32>
    %127 = math.exp %126 : vector<2x128xf32>
    %cst_25 = arith.constant 1.000000e+00 : f32
    %128 = vector.broadcast %cst_25 : f32 to vector<2x128xf32>
    %129 = arith.addf %128, %127 : vector<2x128xf32>
    %130 = arith.divf %128, %129 : vector<2x128xf32>
    %131 = arith.mulf %122, %108 : vector<2x128xf32>
    %132 = arith.mulf %121, %124 : vector<2x128xf32>
    %133 = arith.addf %131, %132 : vector<2x128xf32>
    %134 = math.tanh %133 : vector<2x128xf32>
    %135 = arith.mulf %130, %134 : vector<2x128xf32>
    %136 = arith.truncf %135 : vector<2x128xf32> to vector<2x128xbf16>
    %cst_26 = arith.constant dense<0.000000e+00> : vector<2x512xf32>
    %137 = tpu.matmul %136, %0, %cst_26 {dimension_numbers = #tpu.dot_dimension_numbers<[1], [0], [0], [1], [0, 0, 1, 1], [], []>} : vector<2x128xbf16>, vector<128x512xbf16>, vector<2x512xf32> -> vector<2x512xf32>
    %138 = vector.extract_strided_slice %10 {offsets = [10, 0], sizes = [2, 512], strides = [1, 1]} : vector<16x512xf32> to vector<2x512xf32>
    %139 = arith.addf %137, %138 : vector<2x512xf32>
    %140 = vector.extract_strided_slice %139 {offsets = [0, 0], sizes = [2, 256], strides = [1, 1]} : vector<2x512xf32> to vector<2x256xf32>
    %141 = arith.negf %140 : vector<2x256xf32>
    %142 = math.exp %141 : vector<2x256xf32>
    %cst_27 = arith.constant 1.000000e+00 : f32
    %143 = vector.broadcast %cst_27 : f32 to vector<2x256xf32>
    %144 = arith.addf %143, %142 : vector<2x256xf32>
    %145 = arith.divf %143, %144 : vector<2x256xf32>
    %146 = vector.extract_strided_slice %145 {offsets = [0, 0], sizes = [2, 128], strides = [1, 1]} : vector<2x256xf32> to vector<2x128xf32>
    %147 = vector.extract_strided_slice %145 {offsets = [0, 128], sizes = [2, 128], strides = [1, 1]} : vector<2x256xf32> to vector<2x128xf32>
    %148 = vector.extract_strided_slice %139 {offsets = [0, 256], sizes = [2, 128], strides = [1, 1]} : vector<2x512xf32> to vector<2x128xf32>
    %149 = math.tanh %148 : vector<2x128xf32>
    %150 = vector.extract_strided_slice %139 {offsets = [0, 384], sizes = [2, 128], strides = [1, 1]} : vector<2x512xf32> to vector<2x128xf32>
    %151 = arith.negf %150 : vector<2x128xf32>
    %152 = math.exp %151 : vector<2x128xf32>
    %cst_28 = arith.constant 1.000000e+00 : f32
    %153 = vector.broadcast %cst_28 : f32 to vector<2x128xf32>
    %154 = arith.addf %153, %152 : vector<2x128xf32>
    %155 = arith.divf %153, %154 : vector<2x128xf32>
    %156 = arith.mulf %147, %133 : vector<2x128xf32>
    %157 = arith.mulf %146, %149 : vector<2x128xf32>
    %158 = arith.addf %156, %157 : vector<2x128xf32>
    %159 = math.tanh %158 : vector<2x128xf32>
    %160 = arith.mulf %155, %159 : vector<2x128xf32>
    %161 = arith.truncf %160 : vector<2x128xf32> to vector<2x128xbf16>
    %cst_29 = arith.constant dense<0.000000e+00> : vector<2x512xf32>
    %162 = tpu.matmul %161, %0, %cst_29 {dimension_numbers = #tpu.dot_dimension_numbers<[1], [0], [0], [1], [0, 0, 1, 1], [], []>} : vector<2x128xbf16>, vector<128x512xbf16>, vector<2x512xf32> -> vector<2x512xf32>
    %163 = vector.extract_strided_slice %10 {offsets = [12, 0], sizes = [2, 512], strides = [1, 1]} : vector<16x512xf32> to vector<2x512xf32>
    %164 = arith.addf %162, %163 : vector<2x512xf32>
    %165 = vector.extract_strided_slice %164 {offsets = [0, 0], sizes = [2, 256], strides = [1, 1]} : vector<2x512xf32> to vector<2x256xf32>
    %166 = arith.negf %165 : vector<2x256xf32>
    %167 = math.exp %166 : vector<2x256xf32>
    %cst_30 = arith.constant 1.000000e+00 : f32
    %168 = vector.broadcast %cst_30 : f32 to vector<2x256xf32>
    %169 = arith.addf %168, %167 : vector<2x256xf32>
    %170 = arith.divf %168, %169 : vector<2x256xf32>
    %171 = vector.extract_strided_slice %170 {offsets = [0, 0], sizes = [2, 128], strides = [1, 1]} : vector<2x256xf32> to vector<2x128xf32>
    %172 = vector.extract_strided_slice %170 {offsets = [0, 128], sizes = [2, 128], strides = [1, 1]} : vector<2x256xf32> to vector<2x128xf32>
    %173 = vector.extract_strided_slice %164 {offsets = [0, 256], sizes = [2, 128], strides = [1, 1]} : vector<2x512xf32> to vector<2x128xf32>
    %174 = math.tanh %173 : vector<2x128xf32>
    %175 = vector.extract_strided_slice %164 {offsets = [0, 384], sizes = [2, 128], strides = [1, 1]} : vector<2x512xf32> to vector<2x128xf32>
    %176 = arith.negf %175 : vector<2x128xf32>
    %177 = math.exp %176 : vector<2x128xf32>
    %cst_31 = arith.constant 1.000000e+00 : f32
    %178 = vector.broadcast %cst_31 : f32 to vector<2x128xf32>
    %179 = arith.addf %178, %177 : vector<2x128xf32>
    %180 = arith.divf %178, %179 : vector<2x128xf32>
    %181 = arith.mulf %172, %158 : vector<2x128xf32>
    %182 = arith.mulf %171, %174 : vector<2x128xf32>
    %183 = arith.addf %181, %182 : vector<2x128xf32>
    %184 = math.tanh %183 : vector<2x128xf32>
    %185 = arith.mulf %180, %184 : vector<2x128xf32>
    %186 = arith.truncf %185 : vector<2x128xf32> to vector<2x128xbf16>
    %cst_32 = arith.constant dense<0.000000e+00> : vector<2x512xf32>
    %187 = tpu.matmul %186, %0, %cst_32 {dimension_numbers = #tpu.dot_dimension_numbers<[1], [0], [0], [1], [0, 0, 1, 1], [], []>} : vector<2x128xbf16>, vector<128x512xbf16>, vector<2x512xf32> -> vector<2x512xf32>
    %188 = vector.extract_strided_slice %10 {offsets = [14, 0], sizes = [2, 512], strides = [1, 1]} : vector<16x512xf32> to vector<2x512xf32>
    %189 = arith.addf %187, %188 : vector<2x512xf32>
    %190 = vector.extract_strided_slice %189 {offsets = [0, 0], sizes = [2, 256], strides = [1, 1]} : vector<2x512xf32> to vector<2x256xf32>
    %191 = arith.negf %190 : vector<2x256xf32>
    %192 = math.exp %191 : vector<2x256xf32>
    %cst_33 = arith.constant 1.000000e+00 : f32
    %193 = vector.broadcast %cst_33 : f32 to vector<2x256xf32>
    %194 = arith.addf %193, %192 : vector<2x256xf32>
    %195 = arith.divf %193, %194 : vector<2x256xf32>
    %196 = vector.extract_strided_slice %195 {offsets = [0, 0], sizes = [2, 128], strides = [1, 1]} : vector<2x256xf32> to vector<2x128xf32>
    %197 = vector.extract_strided_slice %195 {offsets = [0, 128], sizes = [2, 128], strides = [1, 1]} : vector<2x256xf32> to vector<2x128xf32>
    %198 = vector.extract_strided_slice %189 {offsets = [0, 256], sizes = [2, 128], strides = [1, 1]} : vector<2x512xf32> to vector<2x128xf32>
    %199 = math.tanh %198 : vector<2x128xf32>
    %200 = vector.extract_strided_slice %189 {offsets = [0, 384], sizes = [2, 128], strides = [1, 1]} : vector<2x512xf32> to vector<2x128xf32>
    %201 = arith.negf %200 : vector<2x128xf32>
    %202 = math.exp %201 : vector<2x128xf32>
    %cst_34 = arith.constant 1.000000e+00 : f32
    %203 = vector.broadcast %cst_34 : f32 to vector<2x128xf32>
    %204 = arith.addf %203, %202 : vector<2x128xf32>
    %205 = arith.divf %203, %204 : vector<2x128xf32>
    %206 = arith.mulf %197, %183 : vector<2x128xf32>
    %207 = arith.mulf %196, %199 : vector<2x128xf32>
    %208 = arith.addf %206, %207 : vector<2x128xf32>
    %209 = math.tanh %208 : vector<2x128xf32>
    %210 = arith.mulf %205, %209 : vector<2x128xf32>
    %211 = vector.extract_strided_slice %210 {offsets = [0, 0], sizes = [1, 128], strides = [1, 1]} : vector<2x128xf32> to vector<1x128xf32>
    %212 = vector.extract_strided_slice %210 {offsets = [1, 0], sizes = [1, 128], strides = [1, 1]} : vector<2x128xf32> to vector<1x128xf32>
    %213 = arith.subf %211, %212 : vector<1x128xf32>
    %214 = math.absf %213 : vector<1x128xf32>
    %c0_35 = arith.constant 0 : index
    %c0_36 = arith.constant 0 : index
    %215 = vector.load %arg4[%c0_35, %c0_36] : memref<192x64xf32, #tpu.memory_space<vmem>>, vector<128x64xf32>
    %c128 = arith.constant 128 : index
    %c0_37 = arith.constant 0 : index
    %216 = vector.load %arg4[%c128, %c0_37] : memref<192x64xf32, #tpu.memory_space<vmem>>, vector<64x2xf32>
    %cst_38 = arith.constant dense<0.000000e+00> : vector<1x64xf32>
    %217 = tpu.matmul %214, %215, %cst_38 {dimension_numbers = #tpu.dot_dimension_numbers<[1], [0], [0], [1], [0, 0, 1, 1], [], []>} : vector<1x128xf32>, vector<128x64xf32>, vector<1x64xf32> -> vector<1x64xf32>
    %218 = arith.addf %217, %4 : vector<1x64xf32>
    %cst_39 = arith.constant dense<0.000000e+00> : vector<1x2xf32>
    %219 = tpu.matmul %218, %216, %cst_39 {dimension_numbers = #tpu.dot_dimension_numbers<[1], [0], [0], [1], [0, 0, 1, 1], [], []>} : vector<1x64xf32>, vector<64x2xf32>, vector<1x2xf32> -> vector<1x2xf32>
    %220 = arith.addf %219, %5 : vector<1x2xf32>
    %c0_40 = arith.constant 0 : index
    %c0_41 = arith.constant 0 : index
    %221 = vector.load %arg5[%c0_40, %c0_41] : memref<1x2xf32, #tpu.memory_space<vmem>>, vector<1x2xf32>
    tpu.vector_store %arg5[%c0_40, %c0_41], %220 {strides = array<i32>} : memref<1x2xf32, #tpu.memory_space<vmem>>, vector<1x2xf32>,
    return
  }
}

</mosaic_0001>

<bundles_post_ra>
// kernel: tpu_custom_call.1
= control target key start
LH: loop header
LB: loop body
LE: loop exit
PB: predicated region body
PF: predicated region fallthrough
CT: control target
= control target key end

     0   :  { %10 = vsyncpa [#allocation3], 0  ;;  %s2845_s0 = inlined_call_operand.vmem [shape: bf16[16,128], index: 0, kind: input, shape index: {}]   ;;  %s2846_s1 = inlined_call_operand.vmem [shape: bf16[128,512], index: 1, kind: input, shape index: {}]   ;;  %s2847_s2 = inlined_call_operand.hbm [shape: bf16[128,512], index: 2, kind: input, shape index: {}]   ;;  %s2848_s3 = inlined_call_operand.vmem [shape: f32[8,512], index: 3, kind: input, shape index: {}]   ;;  %s2849_s4 = inlined_call_operand.vmem [shape: f32[192,64], index: 4, kind: input, shape index: {}]   ;;  %s2850_s5 = inlined_call_operand.hbm [shape: f32[1,2], index: 5, kind: output, shape index: {}]  }
   0x1   :  { %11 = vsyncpa [#allocation4], 0  ;;  %s20_s20 = sshll.u32 %s2847_s2, 4  ;;  %s2120_s21 = smov [#allocation2]   ;;  %s21_s20 = int_to_ptr.hbm [resolvable:$true] %s20_s20 }
   0x2   :  { %s22_s22 = sshll.u32 %s2120_s21, 4  ;;  %s2121_s23 = smov 256   ;;  %s23_s22 = int_to_ptr.vmem [resolvable:$true] %s22_s22 }
   0x3   :  { %s2122_s24 = smov 16  }
   0x4   :  { %28 = dma.hbm_to_vmem [thread:$0]  %s21_s20, 4096, %s23_s22, [#allocation3], %s2121_s23, %s2121_s23, %s2122_s24  }
   0x5   :  { %2116 = dma.done.wait [#allocation3], 4096  }
   0x6   :  { %2117 = vsyncadd [#allocation3], 4294963200  ;;  %v1704_v0 = vld [vmem:[%s2846_s1 + $0xe0] sm:$0xf]  ;;  %v1934_v1 = vld [vmem:[%s2846_s1 + $0xec] sm:$0xf0] }
   0x7   :  { %v1932_v2 = vld [vmem:[%s2846_s1 + $0xe4] sm:$0xf]  ;;  %v1705_v3 = vor.u32 %v1934_v1, %v1704_v0  ;;  %v1706_v4 = vld [vmem:[%s2846_s1 + $0xf0] sm:$0xf0]  ;;  %v1933_v5 = vld [vmem:[%s2846_s1 + $0xec] sm:$0xf] }
   0x8   :  { %v1714_v6 = vld [vmem:[%s2846_s1 + $0xf8] sm:$0xf0]  ;;  %v1709_v7 = vor.u32 %v1932_v2, %v1706_v4  ;;  %v1712_v9 = vld [vmem:[%s2846_s1 + $0xe8] sm:$0xf]  ;;  %v1935_v10 = vld [vmem:[%s2846_s1 + $0xf4] sm:$0xf0] }
   0x9   :  { %v1717_v8 = vor.u32 %v1933_v5, %v1714_v6  ;;  %v1688_v11 = vld [vmem:[%s2846_s1 + $0xc0] sm:$0xf]  ;;  %283 = vmatpush.bf16.msra.mxu0 %v1705_v3  ;;  %v1713_v12 = vor.u32 %v1935_v10, %v1712_v9  ;;  %v1930_v13 = vld [vmem:[%s2846_s1 + $0xcc] sm:$0xf0]  ;;  %v1928_v14 = vld [vmem:[%s2846_s1 + $0xc4] sm:$0xf] }
   0xa   :  { %v1690_v15 = vld [vmem:[%s2846_s1 + $0xd0] sm:$0xf0]  ;;  %297 = vmatpush.bf16.msra.mxu1 %v1709_v7  ;;  %v1689_v16 = vor.u32 %v1930_v13, %v1688_v11  ;;  %v1929_v18 = vld [vmem:[%s2846_s1 + $0xcc] sm:$0xf]  ;;  %v1698_v19 = vld [vmem:[%s2846_s1 + $0xd8] sm:$0xf0] }
   0xb   :  { %325 = vmatpush.bf16.msra.mxu3 %v1717_v8  ;;  %v1693_v17 = vor.u32 %v1928_v14, %v1690_v15  ;;  %v1696_v20 = vld [vmem:[%s2846_s1 + $0xc8] sm:$0xf]  ;;  %311 = vmatpush.bf16.msra.mxu2 %v1713_v12  ;;  %v1701_v21 = vor.u32 %v1929_v18, %v1698_v19  ;;  %v1931_v22 = vld [vmem:[%s2846_s1 + $0xd4] sm:$0xf0]  ;;  %v1672_v23 = vld [vmem:[%s2846_s1 + $0xa0] sm:$0xf] }
   0xc   :  { %v1926_v24 = vld [vmem:[%s2846_s1 + $0xac] sm:$0xf0]  ;;  %v1697_v25 = vor.u32 %v1931_v22, %v1696_v20  ;;  %v1924_v26 = vld [vmem:[%s2846_s1 + $0xa4] sm:$0xf]  ;;  %v1674_v27 = vld [vmem:[%s2846_s1 + $0xb0] sm:$0xf0] }
   0xd   :  { %v1925_v28 = vld [vmem:[%s2846_s1 + $0xac] sm:$0xf]  ;;  %284 = vmatpush.bf16.msra.mxu0 %v1689_v16  ;;  %v1673_v29 = vor.u32 %v1926_v24, %v1672_v23  ;;  %v1682_v30 = vld [vmem:[%s2846_s1 + $0xb8] sm:$0xf0]  ;;  %v1680_v31 = vld [vmem:[%s2846_s1 + $0xa8] sm:$0xf]  ;;  %v1677_v33 = vor.u32 %v1924_v26, %v1674_v27 }
   0xe   :  { %v1927_v32 = vld [vmem:[%s2846_s1 + $0xb4] sm:$0xf0]  ;;  %298 = vmatpush.bf16.msra.mxu1 %v1693_v17  ;;  %v1685_v34 = vor.u32 %v1925_v28, %v1682_v30  ;;  %v1656_v35 = vld [vmem:[%s2846_s1 + $0x80] sm:$0xf]  ;;  %v1922_v36 = vld [vmem:[%s2846_s1 + $0x8c] sm:$0xf0] }
   0xf   :  { %326 = vmatpush.bf16.msra.mxu3 %v1701_v21  ;;  %v1920_v37 = vld [vmem:[%s2846_s1 + $0x84] sm:$0xf]  ;;  %312 = vmatpush.bf16.msra.mxu2 %v1697_v25  ;;  %v1681_v38 = vor.u32 %v1927_v32, %v1680_v31  ;;  %v1658_v39 = vld [vmem:[%s2846_s1 + $0x90] sm:$0xf0]  ;;  %v1921_v40 = vld [vmem:[%s2846_s1 + $0x8c] sm:$0xf]  ;;  %v1657_v44 = vor.u32 %v1922_v36, %v1656_v35 }
  0x10   :  { %v1666_v41 = vld [vmem:[%s2846_s1 + $0x98] sm:$0xf0]  ;;  %v1664_v42 = vld [vmem:[%s2846_s1 + $0x88] sm:$0xf]  ;;  %v1923_v43 = vld [vmem:[%s2846_s1 + $0x94] sm:$0xf0]  ;;  %v1661_v45 = vor.u32 %v1920_v37, %v1658_v39 }
  0x11   :  { %285 = vmatpush.bf16.msra.mxu0 %v1673_v29  ;;  %v1669_v46 = vor.u32 %v1921_v40, %v1666_v41  ;;  %v1640_v47 = vld [vmem:[%s2846_s1 + $0x60] sm:$0xf]  ;;  %v1918_v48 = vld [vmem:[%s2846_s1 + $0x6c] sm:$0xf0]  ;;  %v1916_v49 = vld [vmem:[%s2846_s1 + $0x64] sm:$0xf]  ;;  %v1665_v50 = vor.u32 %v1923_v43, %v1664_v42 }
  0x12   :  { %299 = vmatpush.bf16.msra.mxu1 %v1677_v33  ;;  %v1642_v51 = vld [vmem:[%s2846_s1 + $0x70] sm:$0xf0]  ;;  %v1917_v52 = vld [vmem:[%s2846_s1 + $0x6c] sm:$0xf]  ;;  %v1650_v53 = vld [vmem:[%s2846_s1 + $0x78] sm:$0xf0]  ;;  %v1641_v56 = vor.u32 %v1918_v48, %v1640_v47 }
  0x13   :  { %327 = vmatpush.bf16.msra.mxu3 %v1685_v34  ;;  %313 = vmatpush.bf16.msra.mxu2 %v1681_v38  ;;  %v1648_v54 = vld [vmem:[%s2846_s1 + $0x68] sm:$0xf]  ;;  %v1919_v55 = vld [vmem:[%s2846_s1 + $0x74] sm:$0xf0]  ;;  %v1645_v57 = vor.u32 %v1916_v49, %v1642_v51  ;;  %v1653_v58 = vor.u32 %v1917_v52, %v1650_v53  ;;  %v1624_v59 = vld [vmem:[%s2846_s1 + $0x40] sm:$0xf] }
  0x14   :  { %v1914_v60 = vld [vmem:[%s2846_s1 + $0x4c] sm:$0xf0]  ;;  %v1912_v61 = vld [vmem:[%s2846_s1 + $0x44] sm:$0xf]  ;;  %v1649_v62 = vor.u32 %v1919_v55, %v1648_v54  ;;  %v1626_v63 = vld [vmem:[%s2846_s1 + $0x50] sm:$0xf0] }
  0x15   :  { %286 = vmatpush.bf16.msra.mxu0 %v1657_v44  ;;  %v1913_v0 = vld [vmem:[%s2846_s1 + $0x4c] sm:$0xf]  ;;  %v1634_v1 = vld [vmem:[%s2846_s1 + $0x58] sm:$0xf0]  ;;  %v1632_v2 = vld [vmem:[%s2846_s1 + $0x48] sm:$0xf]  ;;  %v1625_v4 = vor.u32 %v1914_v60, %v1624_v59  ;;  %v1629_v5 = vor.u32 %v1912_v61, %v1626_v63 }
  0x16   :  { %300 = vmatpush.bf16.msra.mxu1 %v1661_v45  ;;  %v1915_v3 = vld [vmem:[%s2846_s1 + $0x54] sm:$0xf0]  ;;  %v1637_v6 = vor.u32 %v1913_v0, %v1634_v1  ;;  %v1608_v7 = vld [vmem:[%s2846_s1 + $0x20] sm:$0xf]  ;;  %v1910_v8 = vld [vmem:[%s2846_s1 + $0x2c] sm:$0xf0] }
  0x17   :  { %328 = vmatpush.bf16.msra.mxu3 %v1669_v46  ;;  %314 = vmatpush.bf16.msra.mxu2 %v1665_v50  ;;  %v1908_v9 = vld [vmem:[%s2846_s1 + $0x24] sm:$0xf]  ;;  %v1633_v10 = vor.u32 %v1915_v3, %v1632_v2  ;;  %v1610_v11 = vld [vmem:[%s2846_s1 + $0x30] sm:$0xf0]  ;;  %v1909_v12 = vld [vmem:[%s2846_s1 + $0x2c] sm:$0xf]  ;;  %v1609_v16 = vor.u32 %v1910_v8, %v1608_v7 }
  0x18   :  { %v1618_v13 = vld [vmem:[%s2846_s1 + $0x38] sm:$0xf0]  ;;  %v1616_v14 = vld [vmem:[%s2846_s1 + $0x28] sm:$0xf]  ;;  %v1911_v15 = vld [vmem:[%s2846_s1 + $0x34] sm:$0xf0]  ;;  %v1613_v19 = vor.u32 %v1908_v9, %v1610_v11 }
  0x19   :  { %287 = vmatpush.bf16.msra.mxu0 %v1641_v56  ;;  %v1592_v17 = vld [vmem:[%s2846_s1] sm:$0xf]  ;;  %v1906_v18 = vld [vmem:[%s2846_s1 + $0xc] sm:$0xf0]  ;;  %v1621_v20 = vor.u32 %v1909_v12, %v1618_v13  ;;  %v1904_v21 = vld [vmem:[%s2846_s1 + $0x4] sm:$0xf]  ;;  %v1617_v24 = vor.u32 %v1911_v15, %v1616_v14 }
  0x1a   :  { %301 = vmatpush.bf16.msra.mxu1 %v1645_v57  ;;  %v1594_v22 = vld [vmem:[%s2846_s1 + $0x10] sm:$0xf0]  ;;  %v1905_v23 = vld [vmem:[%s2846_s1 + $0xc] sm:$0xf]  ;;  %v1602_v25 = vld [vmem:[%s2846_s1 + $0x18] sm:$0xf0]  ;;  %v1593_v31 = vor.u32 %v1906_v18, %v1592_v17 }
  0x1b   :  { %329 = vmatpush.bf16.msra.mxu3 %v1653_v58  ;;  %315 = vmatpush.bf16.msra.mxu2 %v1649_v62  ;;  %v1600_v26 = vld [vmem:[%s2846_s1 + $0x8] sm:$0xf]  ;;  %v1907_v27 = vld [vmem:[%s2846_s1 + $0x14] sm:$0xf0]  ;;  %v1832_v28 = vld [vmem:[#allocation2 + $0xe0] sm:$0xf]  ;;  %v1597_v35 = vor.u32 %v1904_v21, %v1594_v22  ;;  %v1605_v36 = vor.u32 %v1905_v23, %v1602_v25 }
  0x1c   :  { %v1901_v29 = vld [vmem:[#allocation2 + $0xec] sm:$0xf0]  ;;  %v1899_v30 = vld [vmem:[#allocation2 + $0xe4] sm:$0xf]  ;;  %v1834_v32 = vld [vmem:[#allocation2 + $0xf0] sm:$0xf0]  ;;  %v1601_v39 = vor.u32 %v1907_v27, %v1600_v26 }
  0x1d   :  { %288 = vmatpush.bf16.msra.mxu0 %v1625_v4  ;;  %v1900_v33 = vld [vmem:[#allocation2 + $0xec] sm:$0xf]  ;;  %v1842_v34 = vld [vmem:[#allocation2 + $0xf8] sm:$0xf0]  ;;  %v1840_v37 = vld [vmem:[#allocation2 + $0xe8] sm:$0xf]  ;;  %v2349_v40 = vor.u32 %v1901_v29, %v1832_v28  ;;  %v2351_v42 = vor.u32 %v1899_v30, %v1834_v32 }
  0x1e   :  { %302 = vmatpush.bf16.msra.mxu1 %v1629_v5  ;;  %v1902_v38 = vld [vmem:[#allocation2 + $0xf4] sm:$0xf0]  ;;  %v1816_v41 = vld [vmem:[#allocation2 + $0xc0] sm:$0xf]  ;;  %v2353_v43 = vor.u32 %v1900_v33, %v1842_v34  ;;  %v1897_v44 = vld [vmem:[#allocation2 + $0xcc] sm:$0xf0] }
  0x1f   :  { %330 = vmatpush.bf16.msra.mxu3 %v1637_v6  ;;  %316 = vmatpush.bf16.msra.mxu2 %v1633_v10  ;;  %v1895_v45 = vld [vmem:[#allocation2 + $0xc4] sm:$0xf]  ;;  %v1818_v46 = vld [vmem:[#allocation2 + $0xd0] sm:$0xf0]  ;;  %v2355_v47 = vor.u32 %v1902_v38, %v1840_v37  ;;  %v1896_v48 = vld [vmem:[#allocation2 + $0xcc] sm:$0xf]  ;;  %v2361_v53 = vor.u32 %v1897_v44, %v1816_v41 }
  0x20   :  { %v1826_v49 = vld [vmem:[#allocation2 + $0xd8] sm:$0xf0]  ;;  %v1903_v50 = vld [vmem:[%s2845_s0] sm:$0xff]  ;;  %v1824_v51 = vld [vmem:[#allocation2 + $0xc8] sm:$0xf]  ;;  %v2365_v54 = vor.u32 %v1895_v45, %v1818_v46  ;;  %s2123_s25 = smov [#allocation5]  }
  0x21   :  { %289 = vmatpush.bf16.msra.mxu0 %v1609_v16  ;;  %v1898_v52 = vld [vmem:[#allocation2 + $0xd4] sm:$0xf0]  ;;  %v2367_v55 = vor.u32 %v1896_v48, %v1826_v49  ;;  %v1800_v56 = vld [vmem:[#allocation2 + $0xa0] sm:$0xf]  ;;  %v1893_v57 = vld [vmem:[#allocation2 + $0xac] sm:$0xf0] }
  0x22   :  { %303 = vmatpush.bf16.msra.mxu1 %v1613_v19  ;;  %v1891_v58 = vld [vmem:[#allocation2 + $0xa4] sm:$0xf]  ;;  %v2370_v59 = vor.u32 %v1898_v52, %v1824_v51  ;;  %v1802_v60 = vld [vmem:[#allocation2 + $0xb0] sm:$0xf0]  ;;  %v1892_v61 = vld [vmem:[#allocation2 + $0xac] sm:$0xf]  ;;  %v2373_v1 = vor.u32 %v1893_v57, %v1800_v56 }
  0x23   :  { %331 = vmatpush.bf16.msra.mxu3 %v1621_v20  ;;  %317 = vmatpush.bf16.msra.mxu2 %v1617_v24  ;;  %v1810_v62 = vld [vmem:[#allocation2 + $0xb8] sm:$0xf0]  ;;  %v1808_v63 = vld [vmem:[#allocation2 + $0xa8] sm:$0xf]  ;;  %v1894_v0 = vld [vmem:[#allocation2 + $0xb4] sm:$0xf0]  ;;  %v2377_v2 = vor.u32 %v1891_v58, %v1802_v60 }
  0x24   :  { %v2379_v3 = vor.u32 %v1892_v61, %v1810_v62  ;;  %v1784_v4 = vld [vmem:[#allocation2 + $0x80] sm:$0xf]  ;;  %v1889_v5 = vld [vmem:[#allocation2 + $0x8c] sm:$0xf0]  ;;  %v1887_v6 = vld [vmem:[#allocation2 + $0x84] sm:$0xf]  ;;  %v2382_v7 = vor.u32 %v1894_v0, %v1808_v63 }
  0x25   :  { %290 = vmatpush.bf16.msra.mxu0 %v1593_v31  ;;  %v1786_v8 = vld [vmem:[#allocation2 + $0x90] sm:$0xf0]  ;;  %v1888_v9 = vld [vmem:[#allocation2 + $0x8c] sm:$0xf]  ;;  %v1794_v10 = vld [vmem:[#allocation2 + $0x98] sm:$0xf0]  ;;  %v2385_v13 = vor.u32 %v1889_v5, %v1784_v4 }
  0x26   :  { %304 = vmatpush.bf16.msra.mxu1 %v1597_v35  ;;  %v1792_v11 = vld [vmem:[#allocation2 + $0x88] sm:$0xf]  ;;  %v1890_v12 = vld [vmem:[#allocation2 + $0x94] sm:$0xf0]  ;;  %v2389_v14 = vor.u32 %v1887_v6, %v1786_v8  ;;  %v2391_v15 = vor.u32 %v1888_v9, %v1794_v10  ;;  %v1768_v16 = vld [vmem:[#allocation2 + $0x60] sm:$0xf] }
  0x27   :  { %332 = vmatpush.bf16.msra.mxu3 %v1605_v36  ;;  %318 = vmatpush.bf16.msra.mxu2 %v1601_v39  ;;  %v1885_v17 = vld [vmem:[#allocation2 + $0x6c] sm:$0xf0]  ;;  %v1883_v18 = vld [vmem:[#allocation2 + $0x64] sm:$0xf]  ;;  %v2394_v19 = vor.u32 %v1890_v12, %v1792_v11  ;;  %v1770_v20 = vld [vmem:[#allocation2 + $0x70] sm:$0xf0] }
  0x28   :  { %291 = vmatmul.bf16.vlgmr.msra.gmra.mxu0 %v1903_v50  ;;  %v1884_v21 = vld [vmem:[#allocation2 + $0x6c] sm:$0xf]  ;;  %v1778_v22 = vld [vmem:[#allocation2 + $0x78] sm:$0xf0]  ;;  %v1776_v23 = vld [vmem:[#allocation2 + $0x68] sm:$0xf]  ;;  %v2397_v25 = vor.u32 %v1885_v17, %v1768_v16  ;;  %v2404_v27 = vor.u32 %v1883_v18, %v1770_v20 }
  0x29   :  { %508 = vmatpush.bf16.msrb.mxu0 %v2349_v40  ;;  %305 = vmatmul.bf16.vlgmr.msra.gmra.mxu1 %v1903_v50  ;;  %v1886_v24 = vld [vmem:[#allocation2 + $0x74] sm:$0xf0]  ;;  %v70_v26 = vld [vmem:[%s2848_s3] sm:$0x6]  ;;  %v2406_v28 = vor.u32 %v1884_v21, %v1778_v22  ;;  %v1881_v30 = vld [vmem:[#allocation2 + $0x4c] sm:$0xf0] }
  0x2a   :  { %521 = vmatpush.bf16.msrb.mxu1 %v2351_v42  ;;  %333 = vmatmul.bf16.vlgmr.msra.gmra.mxu3 %v1903_v50  ;;  %v1752_v29 = vld [vmem:[#allocation2 + $0x40] sm:$0xf]  ;;  %v1879_v31 = vld [vmem:[#allocation2 + $0x44] sm:$0xf]  ;;  %v2409_v32 = vor.u32 %v1886_v24, %v1776_v23  ;;  %v1754_v33 = vld [vmem:[#allocation2 + $0x50] sm:$0xf0]  ;;  %v339_v38 = vpack.c.bf16 %v70_v26, %v70_v26 }
  0x2b   :  { %547 = vmatpush.bf16.msrb.mxu3 %v2353_v43  ;;  %534 = vmatpush.bf16.msrb.mxu2 %v2355_v47  ;;  %v1880_v34 = vld [vmem:[#allocation2 + $0x4c] sm:$0xf]  ;;  %v1762_v35 = vld [vmem:[#allocation2 + $0x58] sm:$0xf0]  ;;  %v1760_v36 = vld [vmem:[#allocation2 + $0x48] sm:$0xf]  ;;  %v2412_v39 = vor.u32 %v1881_v30, %v1752_v29  ;;  %v2416_v41 = vor.u32 %v1879_v31, %v1754_v33 }
  0x2c   :  { %319 = vmatmul.bf16.vlgmr.msra.gmra.mxu2 %v1903_v50  ;;  %v1882_v37 = vld [vmem:[#allocation2 + $0x54] sm:$0xf0]  ;;  %v2418_v44 = vor.u32 %v1880_v34, %v1762_v35  ;;  %v1736_v45 = vld [vmem:[#allocation2 + $0x20] sm:$0xf]  ;;  %v1877_v46 = vld [vmem:[#allocation2 + $0x2c] sm:$0xf0] }
  0x2d   :  { %509 = vmatpush.bf16.msrb.mxu0 %v2361_v53  ;;  %v1875_v48 = vld [vmem:[#allocation2 + $0x24] sm:$0xf]  ;;  %v2421_v49 = vor.u32 %v1882_v37, %v1760_v36  ;;  %v1738_v50 = vld [vmem:[#allocation2 + $0x30] sm:$0xf0]  ;;  %v1876_v51 = vld [vmem:[#allocation2 + $0x2c] sm:$0xf]  ;;  %v2424_v60 = vor.u32 %v1877_v46, %v1736_v45 }
  0x2e   :  { %522 = vmatpush.bf16.msrb.mxu1 %v2365_v54  ;;  %v1746_v52 = vld [vmem:[#allocation2 + $0x38] sm:$0xf0]  ;;  %v1744_v56 = vld [vmem:[#allocation2 + $0x28] sm:$0xf]  ;;  %v1878_v57 = vld [vmem:[#allocation2 + $0x34] sm:$0xf0]  ;;  %v2428_v61 = vor.u32 %v1875_v48, %v1738_v50 }
  0x2f   :  { %548 = vmatpush.bf16.msrb.mxu3 %v2367_v55  ;;  %535 = vmatpush.bf16.msrb.mxu2 %v2370_v59  ;;  %v343_v58 = vshll.u32 %v339_v38, 16  ;;  %v2430_v62 = vor.u32 %v1876_v51, %v1746_v52  ;;  %v1720_v63 = vld [vmem:[#allocation2] sm:$0xf]  ;;  %v1873_v0 = vld [vmem:[#allocation2 + $0xc] sm:$0xf0]  ;;  %v2433_v5 = vor.u32 %v1878_v57, %v1744_v56  ;;  %v341_v12 = vshrl.u32 %v339_v38, 16 }
  0x30   :  { %v1871_v4 = vld [vmem:[#allocation2 + $0x4] sm:$0xf]  ;;  %v1722_v6 = vld [vmem:[#allocation2 + $0x10] sm:$0xf0]  ;;  %v1872_v8 = vld [vmem:[#allocation2 + $0xc] sm:$0xf]  ;;  %v2436_v17 = vor.u32 %v1873_v0, %v1720_v63 }
  0x31   :  { %510 = vmatpush.bf16.msrb.mxu0 %v2373_v1  ;;  %v1730_v9 = vld [vmem:[#allocation2 + $0x18] sm:$0xf0]  ;;  %v1728_v10 = vld [vmem:[#allocation2 + $0x8] sm:$0xf]  ;;  %v1874_v11 = vld [vmem:[#allocation2 + $0x14] sm:$0xf0]  ;;  %v2440_v18 = vor.u32 %v1871_v4, %v1722_v6 }
  0x32   :  { %523 = vmatpush.bf16.msrb.mxu1 %v2377_v2  ;;  %v345_v16 = vrot.slane %v343_v58, 1  ;;  %v2442_v20 = vor.u32 %v1872_v8, %v1730_v9  ;;  %v2445_v21 = vor.u32 %v1874_v11, %v1728_v10  ;;  %v69_v26 = vld [vmem:[%s2848_s3] ss:$8 sm:$0xf]  ;;  %s1574_s26 = sshll.u32 %s2123_s25, 4  ;;  %s1576_s29 = sshll.u32 %s2850_s5, 4  ;;  %s1575_s26 = int_to_ptr.vmem [resolvable:$true] %s1574_s26  ;;  %s1577_s29 = int_to_ptr.hbm [resolvable:$true] %s1576_s29 }
  0x33   :  { %549 = vmatpush.bf16.msrb.mxu3 %v2379_v3  ;;  %536 = vmatpush.bf16.msrb.mxu2 %v2382_v7  ;;  %v109_v29 = vperm.slane %v69_v26, 0  ;;  %v110_v30 = vperm.slane %v69_v26, 1  ;;  %v112_v38 = vperm.slane %v69_v26, 3  ;;  %v111_v45 = vperm.slane %v69_v26, 2 }
  0x34   :  { %v346_v22 = vor.u32 %v345_v16, %v341_v12 }
  0x35   :  { %511 = vmatpush.bf16.msrb.mxu0 %v2385_v13 }
  0x36   :  { %524 = vmatpush.bf16.msrb.mxu1 %v2389_v14 }
  0x37   :  { %550 = vmatpush.bf16.msrb.mxu3 %v2391_v15  ;;  %537 = vmatpush.bf16.msrb.mxu2 %v2394_v19 }
  0x39   :  { %512 = vmatpush.bf16.msrb.mxu0 %v2397_v25 }
  0x3a   :  { %525 = vmatpush.bf16.msrb.mxu1 %v2404_v27 }
  0x3b   :  { %551 = vmatpush.bf16.msrb.mxu3 %v2406_v28  ;;  %538 = vmatpush.bf16.msrb.mxu2 %v2409_v32 }
  0x3d   :  { %513 = vmatpush.bf16.msrb.mxu0 %v2412_v39 }
  0x3e   :  { %526 = vmatpush.bf16.msrb.mxu1 %v2416_v41 }
  0x3f   :  { %552 = vmatpush.bf16.msrb.mxu3 %v2418_v44  ;;  %539 = vmatpush.bf16.msrb.mxu2 %v2421_v49 }
  0x41   :  { %514 = vmatpush.bf16.msrb.mxu0 %v2424_v60 }
  0x42   :  { %527 = vmatpush.bf16.msrb.mxu1 %v2428_v61 }
  0x43   :  { %553 = vmatpush.bf16.msrb.mxu3 %v2430_v62  ;;  %540 = vmatpush.bf16.msrb.mxu2 %v2433_v5 }
  0x45   :  { %515 = vmatpush.bf16.msrb.mxu0 %v2436_v17 }
  0x46   :  { %528 = vmatpush.bf16.msrb.mxu1 %v2440_v18 }
  0x47   :  { %554 = vmatpush.bf16.msrb.mxu3 %v2442_v20  ;;  %541 = vmatpush.bf16.msrb.mxu2 %v2445_v21 }
  0x48   :  { %516 = vmatmul.bf16.vlgmr.msrb.gmra.mxu0 %v346_v22 }
  0x49   :  { %639 = vmatpush.bf16.msra.mxu0 %v2349_v40  ;;  %529 = vmatmul.bf16.vlgmr.msrb.gmra.mxu1 %v346_v22 }
  0x4a   :  { %652 = vmatpush.bf16.msra.mxu1 %v2351_v42  ;;  %555 = vmatmul.bf16.vlgmr.msrb.gmra.mxu3 %v346_v22 }
  0x4b   :  { %542 = vmatmul.bf16.vlgmr.msrb.gmra.mxu2 %v346_v22  ;;  %678 = vmatpush.bf16.msra.mxu3 %v2353_v43 }
  0x4c   :  { %665 = vmatpush.bf16.msra.mxu2 %v2355_v47 }
  0x4d   :  { %640 = vmatpush.bf16.msra.mxu0 %v2361_v53 }
  0x4e   :  { %653 = vmatpush.bf16.msra.mxu1 %v2365_v54 }
  0x4f   :  { %679 = vmatpush.bf16.msra.mxu3 %v2367_v55 }
  0x50   :  { %666 = vmatpush.bf16.msra.mxu2 %v2370_v59 }
  0x51   :  { %641 = vmatpush.bf16.msra.mxu0 %v2373_v1 }
  0x52   :  { %654 = vmatpush.bf16.msra.mxu1 %v2377_v2 }
  0x53   :  { %680 = vmatpush.bf16.msra.mxu3 %v2379_v3 }
  0x54   :  { %667 = vmatpush.bf16.msra.mxu2 %v2382_v7 }
  0x55   :  { %642 = vmatpush.bf16.msra.mxu0 %v2385_v13 }
  0x56   :  { %655 = vmatpush.bf16.msra.mxu1 %v2389_v14 }
  0x57   :  { %681 = vmatpush.bf16.msra.mxu3 %v2391_v15 }
  0x58   :  { %668 = vmatpush.bf16.msra.mxu2 %v2394_v19 }
  0x59   :  { %643 = vmatpush.bf16.msra.mxu0 %v2397_v25 }
  0x5a   :  { %656 = vmatpush.bf16.msra.mxu1 %v2404_v27 }
  0x5b   :  { %682 = vmatpush.bf16.msra.mxu3 %v2406_v28 }
  0x5c   :  { %669 = vmatpush.bf16.msra.mxu2 %v2409_v32 }
  0x5d   :  { %644 = vmatpush.bf16.msra.mxu0 %v2412_v39 }
  0x5e   :  { %657 = vmatpush.bf16.msra.mxu1 %v2416_v41 }
  0x5f   :  { %683 = vmatpush.bf16.msra.mxu3 %v2418_v44 }
  0x60   :  { %670 = vmatpush.bf16.msra.mxu2 %v2421_v49 }
  0x61   :  { %645 = vmatpush.bf16.msra.mxu0 %v2424_v60 }
  0x62   :  { %658 = vmatpush.bf16.msra.mxu1 %v2428_v61 }
  0x63   :  { %684 = vmatpush.bf16.msra.mxu3 %v2430_v62 }
  0x64   :  { %671 = vmatpush.bf16.msra.mxu2 %v2433_v5 }
  0x65   :  { %646 = vmatpush.bf16.msra.mxu0 %v2436_v17 }
  0x66   :  { %659 = vmatpush.bf16.msra.mxu1 %v2440_v18 }
  0x67   :  { %685 = vmatpush.bf16.msra.mxu3 %v2442_v20 }
  0x68   :  { %672 = vmatpush.bf16.msra.mxu2 %v2445_v21 }
  0x69   :  { %763 = vmatpush.bf16.msrb.mxu0 %v2349_v40 }
  0x6a   :  { %776 = vmatpush.bf16.msrb.mxu1 %v2351_v42 }
  0x6b   :  { %802 = vmatpush.bf16.msrb.mxu3 %v2353_v43 }
  0x6c   :  { %789 = vmatpush.bf16.msrb.mxu2 %v2355_v47 }
  0x6d   :  { %764 = vmatpush.bf16.msrb.mxu0 %v2361_v53 }
  0x6e   :  { %777 = vmatpush.bf16.msrb.mxu1 %v2365_v54 }
  0x6f   :  { %803 = vmatpush.bf16.msrb.mxu3 %v2367_v55 }
  0x70   :  { %790 = vmatpush.bf16.msrb.mxu2 %v2370_v59 }
  0x71   :  { %765 = vmatpush.bf16.msrb.mxu0 %v2373_v1 }
  0x72   :  { %778 = vmatpush.bf16.msrb.mxu1 %v2377_v2 }
  0x73   :  { %804 = vmatpush.bf16.msrb.mxu3 %v2379_v3 }
  0x74   :  { %791 = vmatpush.bf16.msrb.mxu2 %v2382_v7 }
  0x75   :  { %766 = vmatpush.bf16.msrb.mxu0 %v2385_v13 }
  0x76   :  { %779 = vmatpush.bf16.msrb.mxu1 %v2389_v14 }
  0x77   :  { %805 = vmatpush.bf16.msrb.mxu3 %v2391_v15 }
  0x78   :  { %792 = vmatpush.bf16.msrb.mxu2 %v2394_v19 }
  0x79   :  { %767 = vmatpush.bf16.msrb.mxu0 %v2397_v25 }
  0x7a   :  { %780 = vmatpush.bf16.msrb.mxu1 %v2404_v27 }
  0x7b   :  { %806 = vmatpush.bf16.msrb.mxu3 %v2406_v28 }
  0x7c   :  { %793 = vmatpush.bf16.msrb.mxu2 %v2409_v32 }
  0x7d   :  { %768 = vmatpush.bf16.msrb.mxu0 %v2412_v39 }
  0x7e   :  { %781 = vmatpush.bf16.msrb.mxu1 %v2416_v41 }
  0x7f   :  { %807 = vmatpush.bf16.msrb.mxu3 %v2418_v44 }
  0x80   :  { %794 = vmatpush.bf16.msrb.mxu2 %v2421_v49 }
  0x81   :  { %769 = vmatpush.bf16.msrb.mxu0 %v2424_v60 }
  0x82   :  { %782 = vmatpush.bf16.msrb.mxu1 %v2428_v61 }
  0x83   :  { %808 = vmatpush.bf16.msrb.mxu3 %v2430_v62 }
  0x84   :  { %795 = vmatpush.bf16.msrb.mxu2 %v2433_v5 }
  0x85   :  { %770 = vmatpush.bf16.msrb.mxu0 %v2436_v17 }
  0x86   :  { %783 = vmatpush.bf16.msrb.mxu1 %v2440_v18 }
  0x87   :  { %809 = vmatpush.bf16.msrb.mxu3 %v2442_v20 }
  0x88   :  { %796 = vmatpush.bf16.msrb.mxu2 %v2445_v21 }
  0xa5   :  { %v292_v23 = vpop.f32.mrf.mxu0 }
  0xa6   :  { %v306_v24 = vpop.f32.mrf.mxu1  ;;  %v2526_v52 = vadd.f32 %v292_v23, %v109_v29 }
  0xa7   :  { %v2528_v56 = vadd.f32 %v306_v24, %v110_v30 }
  0xad   :  { %v334_v31 = vpop.f32.mrf.mxu3  ;;  %v294_v33 = vpop.f32.mrf.mxu0 }
  0xae   :  { %v2518_v35 = vadd.f32 %v294_v33, %v109_v29  ;;  %v308_v36 = vpop.f32.mrf.mxu1  ;;  %v2532_v8 = vadd.f32 %v334_v31, %v112_v38 }
  0xaf   :  { %v320_v34 = vpop.f32.mrf.mxu2  ;;  %v2520_v37 = vadd.f32 %v308_v36, %v110_v30 }
  0xb0   :  { %v2535_v33 = vadd.f32 %v320_v34, %v111_v45 }
  0xb1   :  { %2854 = vst [vmem:[#allocation8_spill] sm:$0xff] %v2520_v37 }
  0xb5   :  { %v336_v46 = vpop.f32.mrf.mxu3 }
  0xb6   :  { %v2522_v48 = vadd.f32 %v336_v46, %v112_v38 }
  0xb7   :  { %v322_v50 = vpop.f32.mrf.mxu2 }
  0xb8   :  { %2855 = vst [vmem:[#allocation9_spill] sm:$0xff] %v2522_v48  ;;  %v2524_v51 = vadd.f32 %v322_v50, %v111_v45 }
  0xba   :  { %2856 = vst [vmem:[#allocation10_spill] sm:$0xff] %v2524_v51 }
  0xc5   :  { %v517_v57 = vpop.f32.mrf.mxu0 }
  0xc6   :  { %v518_v58 = vadd.f32 %v517_v57, %v2526_v52  ;;  %v530_v63 = vpop.f32.mrf.mxu1 }
  0xc7   :  { %v531_v0 = vadd.f32 %v530_v63, %v2528_v56 }
  0xc8   :  { %v1846_v4 = vmul.f32 -1.442695, %v518_v58 }
  0xc9   :  { %v1847_v6 = vmul.f32 -1.442695, %v531_v0 }
  0xca   :  { %1940 = vpow2.f32 %v1846_v4 }
  0xcb   :  { %1942 = vpow2.f32 %v1847_v6  ;;  %v71_v6 = vld [vmem:[%s2848_s3] sm:$0x18] }
  0xcd   :  { %v556_v9 = vpop.f32.mrf.mxu3  ;;  %v519_v12 = vpop.f32.mrf.mxu0 }
  0xce   :  { %v557_v10 = vadd.f32 %v556_v9, %v2532_v8  ;;  %v543_v11 = vpop.f32.mrf.mxu2  ;;  %v532_v16 = vpop.f32.mrf.mxu1 }
  0xcf   :  { %v544_v50 = vadd.f32 %v543_v11, %v2535_v33 }
  0xd0   :  { %v1848_v22 = vmul.f32 -1.442695, %v557_v10  ;;  %v1941_v23 = vpop.eup %1940 }
  0xd1   :  { %v1943_v24 = vpop.eup %1942  ;;  %v566_v26 = vadd.f32 1.0, %v1941_v23  ;;  %v619_v23 = vrot.slane %v71_v6, 3 }
  0xd2   :  { %1944 = vpow2.f32 %v1848_v22  ;;  %v567_v29 = vadd.f32 1.0, %v1943_v24 }
  0xd3   :  { %1946 = vrcp.f32 %v566_v26  ;;  %v579_v9 = vand.u32 2147483648, %v566_v26  ;;  %v577_v10 = vand.u32 2147483647, %v566_v26  ;;  %vm573_vm2 = vweird.f32 %v566_v26 }
  0xd4   :  { %1948 = vrcp.f32 %v567_v29  ;;  %v594_v34 = vand.u32 2147483648, %v567_v29  ;;  %v592_v16 = vand.u32 2147483647, %v567_v29  ;;  %vm588_vm3 = vweird.f32 %v567_v29 }
  0xd5   :  { %v558_v30 = vpop.f32.mrf.mxu3  ;;  %vm578_vm6 = vcmp.eq.f32.partialorder %v577_v10, 8.507059e+37 }
  0xd6   :  { %v545_v31 = vpop.f32.mrf.mxu2  ;;  %v580_v30 = vor.u32 1.1754944e-38, %v579_v9  ;;  %vm593_vm7 = vcmp.eq.f32.partialorder %v592_v16, 8.507059e+37 }
  0xd8   :  { %v1945_v36 = vpop.eup %1944 }
  0xd9   :  { %v602_v38 = vadd.f32 1.0, %v1945_v36  ;;  %v1947_v46 = vpop.eup %1946  ;;  %v595_v36 = vor.u32 1.1754944e-38, %v594_v34 }
  0xda   :  { %v1949_v57 = vpop.eup %1948  ;;  %v569_v58 = vmul.f32 %v1947_v46, %v566_v26  ;;  %vm574_vm0 = vweird.f32 %v1947_v46 }
  0xdb   :  { %1950 = vrcp.f32 %v602_v38  ;;  %v584_v63 = vmul.f32 %v1949_v57, %v567_v29  ;;  %vm589_vm1 = vweird.f32 %v1949_v57  ;;  %vm575_vm4 = vmor %vm573_vm2, %vm574_vm0  ;;  %v614_v6 = vand.u32 2147483648, %v602_v38 }
  0xdc   :  { %v570_v0 = vsub.f32 1.0, %v569_v58  ;;  %1952 = vtanh.f32 %v544_v50  ;;  %vm590_vm5 = vmor %vm588_vm3, %vm589_vm1  ;;  %vm608_vm9 = vweird.f32 %v602_v38  ;;  %v612_v9 = vand.u32 2147483647, %v602_v38 }
  0xdd   :  { %v585_v4 = vsub.f32 1.0, %v584_v63  ;;  %v615_v34 = vor.u32 1.1754944e-38, %v614_v6 }
  0xde   :  { %v571_v45 = vmul.f32 %v1947_v46, %v570_v0  ;;  %vm613_vm11 = vcmp.eq.f32.partialorder %v612_v9, 8.507059e+37 }
  0xdf   :  { %v586_v12 = vmul.f32 %v1949_v57, %v585_v4 }
  0xe0   :  { %v572_v22 = vadd.f32 %v1947_v46, %v571_v45 }
  0xe1   :  { %v1951_v11 = vpop.eup %1950  ;;  %v587_v31 = vadd.f32 %v1949_v57, %v586_v12 }
  0xe2   :  { %v604_v24 = vmul.f32 %v1951_v11, %v602_v38  ;;  %v576_v58 = vsel %vm575_vm4, %v1947_v46, %v572_v22  ;;  %v1953_v50 = vpop.eup %1952  ;;  %vm609_vm8 = vweird.f32 %v1951_v11 }
  0xe3   :  { %v581_v0 = vsel %vm578_vm6, %v580_v30, %v576_v58  ;;  %v591_v51 = vsel %vm590_vm5, %v1949_v57, %v587_v31  ;;  %vm610_vm10 = vmor %vm608_vm9, %vm609_vm8  ;;  %v634_v30 = vrot.slane %v2532_v8, 2 }
  0xe4   :  { %v605_v63 = vsub.f32 1.0, %v604_v24  ;;  %v596_v4 = vsel %vm593_vm7, %v595_v36, %v591_v51  ;;  %v622_v48 = vmul.f32 %v1953_v50, %v581_v0 }
  0xe5   :  { %v621_v37 = vmul.f32 %v619_v23, %v596_v4 }
  0xe6   :  { %v606_v45 = vmul.f32 %v1951_v11, %v605_v63 }
  0xe7   :  { %v2541_v26 = vadd.f32 %v622_v48, %v621_v37  ;;  %v631_v37 = vrot.slane %v2526_v52, 2  ;;  %v632_v48 = vrot.slane %v2528_v56, 2 }
  0xe8   :  { %v607_v29 = vadd.f32 %v1951_v11, %v606_v45 }
  0xe9   :  { %1954 = vtanh.f32 %v2541_v26 }
  0xea   :  { %v611_v46 = vsel %vm610_vm10, %v1951_v11, %v607_v29 }
  0xeb   :  { %v616_v57 = vsel %vm613_vm11, %v615_v34, %v611_v46 }
  0xef   :  { %v1955_v10 = vpop.eup %1954 }
  0xf0   :  { %v625_v12 = vmul.f32 %v1955_v10, %v616_v57  ;;  %v633_v10 = vrot.slane %v2535_v33, 2 }
  0xf2   :  { %v626_v51 = vpack.c.bf16 %v625_v12, %v625_v12 }
  0xf4   :  { %647 = vmatmul.bf16.vlgmr.msra.gmra.mxu0 %v626_v51  ;;  %660 = vmatmul.bf16.vlgmr.msra.gmra.mxu1 %v626_v51 }
  0xf5   :  { %673 = vmatmul.bf16.vlgmr.msra.gmra.mxu2 %v626_v51  ;;  %686 = vmatmul.bf16.vlgmr.msra.gmra.mxu3 %v626_v51 }
  0xf6   :  { %887 = vmatpush.bf16.msra.mxu0 %v2349_v40  ;;  %900 = vmatpush.bf16.msra.mxu1 %v2351_v42 }
  0xf7   :  { %913 = vmatpush.bf16.msra.mxu2 %v2355_v47  ;;  %926 = vmatpush.bf16.msra.mxu3 %v2353_v43 }
  0xfa   :  { %888 = vmatpush.bf16.msra.mxu0 %v2361_v53  ;;  %901 = vmatpush.bf16.msra.mxu1 %v2365_v54 }
  0xfb   :  { %914 = vmatpush.bf16.msra.mxu2 %v2370_v59  ;;  %927 = vmatpush.bf16.msra.mxu3 %v2367_v55 }
  0xfe   :  { %889 = vmatpush.bf16.msra.mxu0 %v2373_v1  ;;  %902 = vmatpush.bf16.msra.mxu1 %v2377_v2 }
  0xff   :  { %915 = vmatpush.bf16.msra.mxu2 %v2382_v7  ;;  %928 = vmatpush.bf16.msra.mxu3 %v2379_v3 }
 0x102   :  { %890 = vmatpush.bf16.msra.mxu0 %v2385_v13  ;;  %903 = vmatpush.bf16.msra.mxu1 %v2389_v14 }
 0x103   :  { %916 = vmatpush.bf16.msra.mxu2 %v2394_v19  ;;  %929 = vmatpush.bf16.msra.mxu3 %v2391_v15 }
 0x106   :  { %891 = vmatpush.bf16.msra.mxu0 %v2397_v25  ;;  %904 = vmatpush.bf16.msra.mxu1 %v2404_v27 }
 0x107   :  { %917 = vmatpush.bf16.msra.mxu2 %v2409_v32  ;;  %930 = vmatpush.bf16.msra.mxu3 %v2406_v28 }
 0x10a   :  { %892 = vmatpush.bf16.msra.mxu0 %v2412_v39  ;;  %905 = vmatpush.bf16.msra.mxu1 %v2416_v41 }
 0x10b   :  { %918 = vmatpush.bf16.msra.mxu2 %v2421_v49  ;;  %931 = vmatpush.bf16.msra.mxu3 %v2418_v44 }
 0x10e   :  { %893 = vmatpush.bf16.msra.mxu0 %v2424_v60  ;;  %906 = vmatpush.bf16.msra.mxu1 %v2428_v61 }
 0x10f   :  { %919 = vmatpush.bf16.msra.mxu2 %v2433_v5  ;;  %932 = vmatpush.bf16.msra.mxu3 %v2430_v62 }
 0x112   :  { %894 = vmatpush.bf16.msra.mxu0 %v2436_v17  ;;  %907 = vmatpush.bf16.msra.mxu1 %v2440_v18 }
 0x113   :  { %920 = vmatpush.bf16.msra.mxu2 %v2445_v21  ;;  %933 = vmatpush.bf16.msra.mxu3 %v2442_v20 }
 0x171   :  { %v648_v38 = vpop.f32.mrf.mxu0  ;;  %v661_v16 = vpop.f32.mrf.mxu1 }
 0x172   :  { %v649_v11 = vadd.f32 %v648_v38, %v631_v37  ;;  %v662_v22 = vadd.f32 %v661_v16, %v632_v48 }
 0x174   :  { %v1849_v23 = vmul.f32 -1.442695, %v649_v11  ;;  %v1850_v24 = vmul.f32 -1.442695, %v662_v22 }
 0x176   :  { %1956 = vpow2.f32 %v1849_v23 }
 0x177   :  { %1958 = vpow2.f32 %v1850_v24 }
 0x178   :  { %v674_v31 = vpop.f32.mrf.mxu2  ;;  %v687_v36 = vpop.f32.mrf.mxu3 }
 0x179   :  { %v688_v58 = vadd.f32 %v687_v36, %v634_v30  ;;  %v650_v50 = vpop.f32.mrf.mxu0  ;;  %v663_v63 = vpop.f32.mrf.mxu1  ;;  %v675_v51 = vadd.f32 %v674_v31, %v633_v10 }
 0x17b   :  { %v1851_v0 = vmul.f32 -1.442695, %v688_v58 }
 0x17c   :  { %v1957_v4 = vpop.eup %1956 }
 0x17d   :  { %v1959_v45 = vpop.eup %1958  ;;  %v697_v29 = vadd.f32 1.0, %v1957_v4  ;;  %1960 = vpow2.f32 %v1851_v0 }
 0x17e   :  { %v698_v6 = vadd.f32 1.0, %v1959_v45 }
 0x17f   :  { %1962 = vrcp.f32 %v697_v29  ;;  %v710_v22 = vand.u32 2147483648, %v697_v29  ;;  %v708_v30 = vand.u32 2147483647, %v697_v29  ;;  %vm704_vm14 = vweird.f32 %v697_v29 }
 0x180   :  { %1964 = vrcp.f32 %v698_v6  ;;  %v676_v9 = vpop.f32.mrf.mxu2  ;;  %v689_v46 = vpop.f32.mrf.mxu3  ;;  %v725_v23 = vand.u32 2147483648, %v698_v6  ;;  %v723_v58 = vand.u32 2147483647, %v698_v6  ;;  %vm719_vm15 = vweird.f32 %v698_v6 }
 0x181   :  { %v711_v31 = vor.u32 1.1754944e-38, %v710_v22  ;;  %vm709_vm2 = vcmp.eq.f32.partialorder %v708_v30, 8.507059e+37 }
 0x182   :  { %v726_v45 = vor.u32 1.1754944e-38, %v725_v23  ;;  %vm724_vm3 = vcmp.eq.f32.partialorder %v723_v58, 8.507059e+37 }
 0x183   :  { %v1961_v34 = vpop.eup %1960 }
 0x184   :  { %v733_v57 = vadd.f32 1.0, %v1961_v34 }
 0x185   :  { %v1963_v12 = vpop.eup %1962 }
 0x186   :  { %v1965_v37 = vpop.eup %1964  ;;  %v700_v48 = vmul.f32 %v1963_v12, %v697_v29  ;;  %1966 = vrcp.f32 %v733_v57  ;;  %vm705_vm12 = vweird.f32 %v1963_v12  ;;  %v745_v22 = vand.u32 2147483648, %v733_v57 }
 0x187   :  { %v715_v38 = vmul.f32 %v1965_v37, %v698_v6  ;;  %1968 = vtanh.f32 %v675_v51  ;;  %vm720_vm13 = vweird.f32 %v1965_v37  ;;  %vm706_vm0 = vmor %vm704_vm14, %vm705_vm12  ;;  %vm739_vm5 = vweird.f32 %v733_v57 }
 0x188   :  { %v701_v16 = vsub.f32 1.0, %v700_v48  ;;  %vm721_vm1 = vmor %vm719_vm15, %vm720_vm13 }
 0x189   :  { %v716_v11 = vsub.f32 1.0, %v715_v38 }
 0x18a   :  { %v702_v24 = vmul.f32 %v1963_v12, %v701_v16 }
 0x18b   :  { %v717_v36 = vmul.f32 %v1965_v37, %v716_v11 }
 0x18c   :  { %v1967_v50 = vpop.eup %1966  ;;  %v703_v63 = vadd.f32 %v1963_v12, %v702_v24  ;;  %v746_v24 = vor.u32 1.1754944e-38, %v745_v22 }
 0x18d   :  { %v718_v0 = vadd.f32 %v1965_v37, %v717_v36  ;;  %v735_v4 = vmul.f32 %v1967_v50, %v733_v57  ;;  %v1969_v46 = vpop.eup %1968  ;;  %vm740_vm4 = vweird.f32 %v1967_v50 }
 0x18e   :  { %v707_v9 = vsel %vm706_vm0, %v1963_v12, %v703_v63  ;;  %v743_v12 = vand.u32 2147483647, %v733_v57  ;;  %vm741_vm6 = vmor %vm739_vm5, %vm740_vm4  ;;  %v756_v57 = vrot.slane %v2528_v56, 4 }
 0x18f   :  { %v712_v34 = vsel %vm709_vm2, %v711_v31, %v707_v9  ;;  %v722_v10 = vsel %vm721_vm1, %v1965_v37, %v718_v0  ;;  %v736_v51 = vsub.f32 1.0, %v735_v4  ;;  %v758_v9 = vrot.slane %v2532_v8, 4 }
 0x190   :  { %v727_v48 = vsel %vm724_vm3, %v726_v45, %v722_v10  ;;  %v750_v38 = vmul.f32 %v1969_v46, %v712_v34  ;;  %vm744_vm7 = vcmp.eq.f32.partialorder %v743_v12, 8.507059e+37 }
 0x191   :  { %v749_v16 = vmul.f32 %v727_v48, %v2541_v26  ;;  %v737_v11 = vmul.f32 %v1967_v50, %v736_v51  ;;  %v755_v26 = vrot.slane %v2526_v52, 4 }
 0x193   :  { %v2581_v29 = vadd.f32 %v750_v38, %v749_v16  ;;  %v738_v6 = vadd.f32 %v1967_v50, %v737_v11 }
 0x195   :  { %1970 = vtanh.f32 %v2581_v29  ;;  %v742_v23 = vsel %vm741_vm6, %v1967_v50, %v738_v6 }
 0x196   :  { %v747_v30 = vsel %vm744_vm7, %v746_v24, %v742_v23 }
 0x19b   :  { %v1971_v37 = vpop.eup %1970 }
 0x19c   :  { %v753_v36 = vmul.f32 %v1971_v37, %v747_v30  ;;  %v757_v37 = vrot.slane %v2535_v33, 4 }
 0x19e   :  { %v754_v58 = vpack.c.bf16 %v753_v36, %v753_v36 }
 0x1a0   :  { %771 = vmatmul.bf16.vlgmr.msrb.gmra.mxu0 %v754_v58  ;;  %784 = vmatmul.bf16.vlgmr.msrb.gmra.mxu1 %v754_v58 }
 0x1a1   :  { %797 = vmatmul.bf16.vlgmr.msrb.gmra.mxu2 %v754_v58  ;;  %810 = vmatmul.bf16.vlgmr.msrb.gmra.mxu3 %v754_v58 }
 0x1a2   :  { %1003 = vmatpush.bf16.msrb.mxu0 %v2349_v40  ;;  %1016 = vmatpush.bf16.msrb.mxu1 %v2351_v42 }
 0x1a3   :  { %1029 = vmatpush.bf16.msrb.mxu2 %v2355_v47  ;;  %1042 = vmatpush.bf16.msrb.mxu3 %v2353_v43 }
 0x1a6   :  { %1004 = vmatpush.bf16.msrb.mxu0 %v2361_v53  ;;  %1017 = vmatpush.bf16.msrb.mxu1 %v2365_v54 }
 0x1a7   :  { %1030 = vmatpush.bf16.msrb.mxu2 %v2370_v59  ;;  %1043 = vmatpush.bf16.msrb.mxu3 %v2367_v55 }
 0x1aa   :  { %1005 = vmatpush.bf16.msrb.mxu0 %v2373_v1  ;;  %1018 = vmatpush.bf16.msrb.mxu1 %v2377_v2 }
 0x1ab   :  { %1031 = vmatpush.bf16.msrb.mxu2 %v2382_v7  ;;  %1044 = vmatpush.bf16.msrb.mxu3 %v2379_v3 }
 0x1ae   :  { %1006 = vmatpush.bf16.msrb.mxu0 %v2385_v13  ;;  %1019 = vmatpush.bf16.msrb.mxu1 %v2389_v14 }
 0x1af   :  { %1032 = vmatpush.bf16.msrb.mxu2 %v2394_v19  ;;  %1045 = vmatpush.bf16.msrb.mxu3 %v2391_v15 }
 0x1b2   :  { %1007 = vmatpush.bf16.msrb.mxu0 %v2397_v25  ;;  %1020 = vmatpush.bf16.msrb.mxu1 %v2404_v27 }
 0x1b3   :  { %1033 = vmatpush.bf16.msrb.mxu2 %v2409_v32  ;;  %1046 = vmatpush.bf16.msrb.mxu3 %v2406_v28 }
 0x1b6   :  { %1008 = vmatpush.bf16.msrb.mxu0 %v2412_v39  ;;  %1021 = vmatpush.bf16.msrb.mxu1 %v2416_v41 }
 0x1b7   :  { %1034 = vmatpush.bf16.msrb.mxu2 %v2421_v49  ;;  %1047 = vmatpush.bf16.msrb.mxu3 %v2418_v44 }
 0x1ba   :  { %1009 = vmatpush.bf16.msrb.mxu0 %v2424_v60  ;;  %1022 = vmatpush.bf16.msrb.mxu1 %v2428_v61 }
 0x1bb   :  { %1035 = vmatpush.bf16.msrb.mxu2 %v2433_v5  ;;  %1048 = vmatpush.bf16.msrb.mxu3 %v2430_v62 }
 0x1be   :  { %1010 = vmatpush.bf16.msrb.mxu0 %v2436_v17  ;;  %1023 = vmatpush.bf16.msrb.mxu1 %v2440_v18 }
 0x1bf   :  { %1036 = vmatpush.bf16.msrb.mxu2 %v2445_v21  ;;  %1049 = vmatpush.bf16.msrb.mxu3 %v2442_v20 }
 0x21d   :  { %v772_v50 = vpop.f32.mrf.mxu0  ;;  %v785_v63 = vpop.f32.mrf.mxu1 }
 0x21e   :  { %v773_v31 = vadd.f32 %v772_v50, %v755_v26  ;;  %v786_v0 = vadd.f32 %v785_v63, %v756_v57 }
 0x220   :  { %v1852_v4 = vmul.f32 -1.442695, %v773_v31  ;;  %v1853_v45 = vmul.f32 -1.442695, %v786_v0 }
 0x222   :  { %1972 = vpow2.f32 %v1852_v4 }
 0x223   :  { %1974 = vpow2.f32 %v1853_v45 }
 0x224   :  { %v798_v46 = vpop.f32.mrf.mxu2  ;;  %v811_v34 = vpop.f32.mrf.mxu3 }
 0x225   :  { %v812_v10 = vadd.f32 %v811_v34, %v758_v9  ;;  %v774_v51 = vpop.f32.mrf.mxu0  ;;  %v787_v48 = vpop.f32.mrf.mxu1  ;;  %v799_v58 = vadd.f32 %v798_v46, %v757_v37 }
 0x227   :  { %v1854_v38 = vmul.f32 -1.442695, %v812_v10 }
 0x228   :  { %v1973_v16 = vpop.eup %1972 }
 0x229   :  { %v1975_v11 = vpop.eup %1974  ;;  %v821_v6 = vadd.f32 1.0, %v1973_v16  ;;  %1976 = vpow2.f32 %v1854_v38 }
 0x22a   :  { %v822_v22 = vadd.f32 1.0, %v1975_v11 }
 0x22b   :  { %1978 = vrcp.f32 %v821_v6  ;;  %v834_v0 = vand.u32 2147483648, %v821_v6  ;;  %v832_v9 = vand.u32 2147483647, %v821_v6  ;;  %vm828_vm10 = vweird.f32 %v821_v6 }
 0x22c   :  { %1980 = vrcp.f32 %v822_v22  ;;  %v800_v12 = vpop.f32.mrf.mxu2  ;;  %v813_v23 = vpop.f32.mrf.mxu3  ;;  %v849_v4 = vand.u32 2147483648, %v822_v22  ;;  %v847_v10 = vand.u32 2147483647, %v822_v22  ;;  %vm843_vm11 = vweird.f32 %v822_v22 }
 0x22d   :  { %v835_v46 = vor.u32 1.1754944e-38, %v834_v0  ;;  %vm833_vm14 = vcmp.eq.f32.partialorder %v832_v9, 8.507059e+37 }
 0x22e   :  { %v850_v11 = vor.u32 1.1754944e-38, %v849_v4  ;;  %vm848_vm15 = vcmp.eq.f32.partialorder %v847_v10, 8.507059e+37 }
 0x22f   :  { %v1977_v24 = vpop.eup %1976 }
 0x230   :  { %v857_v30 = vadd.f32 1.0, %v1977_v24 }
 0x231   :  { %v1979_v36 = vpop.eup %1978 }
 0x232   :  { %v1981_v26 = vpop.eup %1980  ;;  %v824_v57 = vmul.f32 %v1979_v36, %v821_v6  ;;  %1982 = vrcp.f32 %v857_v30  ;;  %vm829_vm8 = vweird.f32 %v1979_v36  ;;  %v869_v0 = vand.u32 2147483648, %v857_v30 }
 0x233   :  { %v839_v50 = vmul.f32 %v1981_v26, %v822_v22  ;;  %1984 = vtanh.f32 %v799_v58  ;;  %vm844_vm9 = vweird.f32 %v1981_v26  ;;  %vm830_vm12 = vmor %vm828_vm10, %vm829_vm8  ;;  %vm863_vm1 = vweird.f32 %v857_v30 }
 0x234   :  { %v825_v63 = vsub.f32 1.0, %v824_v57  ;;  %vm845_vm13 = vmor %vm843_vm11, %vm844_vm9 }
 0x235   :  { %v840_v31 = vsub.f32 1.0, %v839_v50 }
 0x236   :  { %v826_v45 = vmul.f32 %v1979_v36, %v825_v63 }
 0x237   :  { %v841_v34 = vmul.f32 %v1981_v26, %v840_v31 }
 0x238   :  { %v1983_v51 = vpop.eup %1982  ;;  %v827_v48 = vadd.f32 %v1979_v36, %v826_v45  ;;  %v870_v45 = vor.u32 1.1754944e-38, %v869_v0 }
 0x239   :  { %v842_v38 = vadd.f32 %v1981_v26, %v841_v34  ;;  %v859_v16 = vmul.f32 %v1983_v51, %v857_v30  ;;  %v1985_v23 = vpop.eup %1984  ;;  %vm864_vm0 = vweird.f32 %v1983_v51 }
 0x23a   :  { %v831_v12 = vsel %vm830_vm12, %v1979_v36, %v827_v48  ;;  %v867_v36 = vand.u32 2147483647, %v857_v30  ;;  %vm865_vm2 = vmor %vm863_vm1, %vm864_vm0  ;;  %v880_v30 = vrot.slane %v2528_v56, 6 }
 0x23b   :  { %v836_v24 = vsel %vm833_vm14, %v835_v46, %v831_v12  ;;  %v846_v37 = vsel %vm845_vm13, %v1981_v26, %v842_v38  ;;  %v860_v58 = vsub.f32 1.0, %v859_v16  ;;  %v882_v12 = vrot.slane %v2532_v8, 6 }
 0x23c   :  { %v851_v57 = vsel %vm848_vm15, %v850_v11, %v846_v37  ;;  %v874_v50 = vmul.f32 %v1985_v23, %v836_v24  ;;  %vm868_vm3 = vcmp.eq.f32.partialorder %v867_v36, 8.507059e+37 }
 0x23d   :  { %v873_v63 = vmul.f32 %v851_v57, %v2581_v29  ;;  %v861_v31 = vmul.f32 %v1983_v51, %v860_v58  ;;  %v879_v29 = vrot.slane %v2526_v52, 6 }
 0x23f   :  { %v2621_v6 = vadd.f32 %v874_v50, %v873_v63  ;;  %v862_v22 = vadd.f32 %v1983_v51, %v861_v31 }
 0x241   :  { %1986 = vtanh.f32 %v2621_v6  ;;  %v866_v4 = vsel %vm865_vm2, %v1983_v51, %v862_v22 }
 0x242   :  { %v871_v9 = vsel %vm868_vm3, %v870_v45, %v866_v4  ;;  %v881_v4 = vrot.slane %v2535_v33, 6 }
 0x247   :  { %v1987_v26 = vpop.eup %1986 }
 0x248   :  { %v877_v34 = vmul.f32 %v1987_v26, %v871_v9 }
 0x24a   :  { %v878_v10 = vpack.c.bf16 %v877_v34, %v877_v34 }
 0x24c   :  { %895 = vmatmul.bf16.vlgmr.msra.gmra.mxu0 %v878_v10  ;;  %908 = vmatmul.bf16.vlgmr.msra.gmra.mxu1 %v878_v10 }
 0x24d   :  { %921 = vmatmul.bf16.vlgmr.msra.gmra.mxu2 %v878_v10  ;;  %934 = vmatmul.bf16.vlgmr.msra.gmra.mxu3 %v878_v10 }
 0x24e   :  { %1131 = vmatpush.bf16.msra.mxu0 %v2349_v40  ;;  %1144 = vmatpush.bf16.msra.mxu1 %v2351_v42 }
 0x24f   :  { %1157 = vmatpush.bf16.msra.mxu2 %v2355_v47  ;;  %1170 = vmatpush.bf16.msra.mxu3 %v2353_v43 }
 0x252   :  { %1132 = vmatpush.bf16.msra.mxu0 %v2361_v53  ;;  %1145 = vmatpush.bf16.msra.mxu1 %v2365_v54 }
 0x253   :  { %1158 = vmatpush.bf16.msra.mxu2 %v2370_v59  ;;  %1171 = vmatpush.bf16.msra.mxu3 %v2367_v55 }
 0x256   :  { %1133 = vmatpush.bf16.msra.mxu0 %v2373_v1  ;;  %1146 = vmatpush.bf16.msra.mxu1 %v2377_v2 }
 0x257   :  { %1159 = vmatpush.bf16.msra.mxu2 %v2382_v7  ;;  %1172 = vmatpush.bf16.msra.mxu3 %v2379_v3 }
 0x25a   :  { %1134 = vmatpush.bf16.msra.mxu0 %v2385_v13  ;;  %1147 = vmatpush.bf16.msra.mxu1 %v2389_v14 }
 0x25b   :  { %1160 = vmatpush.bf16.msra.mxu2 %v2394_v19  ;;  %1173 = vmatpush.bf16.msra.mxu3 %v2391_v15 }
 0x25e   :  { %1135 = vmatpush.bf16.msra.mxu0 %v2397_v25  ;;  %1148 = vmatpush.bf16.msra.mxu1 %v2404_v27 }
 0x25f   :  { %1161 = vmatpush.bf16.msra.mxu2 %v2409_v32  ;;  %1174 = vmatpush.bf16.msra.mxu3 %v2406_v28 }
 0x262   :  { %1136 = vmatpush.bf16.msra.mxu0 %v2412_v39  ;;  %1149 = vmatpush.bf16.msra.mxu1 %v2416_v41 }
 0x263   :  { %1162 = vmatpush.bf16.msra.mxu2 %v2421_v49  ;;  %1175 = vmatpush.bf16.msra.mxu3 %v2418_v44 }
 0x266   :  { %1137 = vmatpush.bf16.msra.mxu0 %v2424_v60  ;;  %1150 = vmatpush.bf16.msra.mxu1 %v2428_v61 }
 0x267   :  { %1163 = vmatpush.bf16.msra.mxu2 %v2433_v5  ;;  %1176 = vmatpush.bf16.msra.mxu3 %v2430_v62 }
 0x26a   :  { %1138 = vmatpush.bf16.msra.mxu0 %v2436_v17  ;;  %1151 = vmatpush.bf16.msra.mxu1 %v2440_v18 }
 0x26b   :  { %1164 = vmatpush.bf16.msra.mxu2 %v2445_v21  ;;  %1177 = vmatpush.bf16.msra.mxu3 %v2442_v20 }
 0x2c9   :  { %v896_v51 = vpop.f32.mrf.mxu0  ;;  %v909_v48 = vpop.f32.mrf.mxu1 }
 0x2ca   :  { %v897_v46 = vadd.f32 %v896_v51, %v879_v29  ;;  %v910_v38 = vadd.f32 %v909_v48, %v880_v30 }
 0x2cc   :  { %v1855_v16 = vmul.f32 -1.442695, %v897_v46  ;;  %v1856_v11 = vmul.f32 -1.442695, %v910_v38 }
 0x2ce   :  { %1988 = vpow2.f32 %v1855_v16 }
 0x2cf   :  { %1990 = vpow2.f32 %v1856_v11 }
 0x2d0   :  { %v922_v23 = vpop.f32.mrf.mxu2  ;;  %v935_v24 = vpop.f32.mrf.mxu3 }
 0x2d1   :  { %v936_v37 = vadd.f32 %v935_v24, %v882_v12  ;;  %v898_v58 = vpop.f32.mrf.mxu0  ;;  %v911_v57 = vpop.f32.mrf.mxu1  ;;  %v923_v26 = vadd.f32 %v922_v23, %v881_v4 }
 0x2d3   :  { %v1857_v50 = vmul.f32 -1.442695, %v936_v37 }
 0x2d4   :  { %v1989_v63 = vpop.eup %1988 }
 0x2d5   :  { %v1991_v52 = vpop.eup %1990  ;;  %v945_v31 = vadd.f32 1.0, %v1989_v63  ;;  %1992 = vpow2.f32 %v1857_v50 }
 0x2d6   :  { %v946_v56 = vadd.f32 1.0, %v1991_v52 }
 0x2d7   :  { %1994 = vrcp.f32 %v945_v31  ;;  %v958_v51 = vand.u32 2147483648, %v945_v31  ;;  %v956_v38 = vand.u32 2147483647, %v945_v31  ;;  %vm952_vm6 = vweird.f32 %v945_v31 }
 0x2d8   :  { %1996 = vrcp.f32 %v946_v56  ;;  %v924_v22 = vpop.f32.mrf.mxu2  ;;  %v937_v0 = vpop.f32.mrf.mxu3  ;;  %v973_v48 = vand.u32 2147483648, %v946_v56  ;;  %v971_v11 = vand.u32 2147483647, %v946_v56  ;;  %vm967_vm7 = vweird.f32 %v946_v56 }
 0x2d9   :  { %v959_v23 = vor.u32 1.1754944e-38, %v958_v51  ;;  %vm957_vm10 = vcmp.eq.f32.partialorder %v956_v38, 8.507059e+37  ;;  %v2857_v38 = vld [vmem:[#allocation8_spill] sm:$0xff] }
 0x2da   :  { %v974_v58 = vor.u32 1.1754944e-38, %v973_v48  ;;  %vm972_vm11 = vcmp.eq.f32.partialorder %v971_v11, 8.507059e+37 }
 0x2db   :  { %v1993_v36 = vpop.eup %1992 }
 0x2dc   :  { %v981_v45 = vadd.f32 1.0, %v1993_v36 }
 0x2dd   :  { %v1995_v8 = vpop.eup %1994 }
 0x2de   :  { %v1997_v9 = vpop.eup %1996  ;;  %v948_v34 = vmul.f32 %v1995_v8, %v945_v31  ;;  %1998 = vrcp.f32 %v981_v45  ;;  %vm953_vm4 = vweird.f32 %v1995_v8  ;;  %vm987_vm13 = vweird.f32 %v981_v45 }
 0x2df   :  { %v963_v10 = vmul.f32 %v1997_v9, %v946_v56  ;;  %2000 = vtanh.f32 %v923_v26  ;;  %vm968_vm5 = vweird.f32 %v1997_v9  ;;  %vm954_vm8 = vmor %vm952_vm6, %vm953_vm4 }
 0x2e0   :  { %v949_v29 = vsub.f32 1.0, %v948_v34  ;;  %vm969_vm9 = vmor %vm967_vm7, %vm968_vm5  ;;  %v993_v34 = vand.u32 2147483648, %v981_v45 }
 0x2e1   :  { %v964_v30 = vsub.f32 1.0, %v963_v10 }
 0x2e2   :  { %v950_v46 = vmul.f32 %v1995_v8, %v949_v29  ;;  %v994_v29 = vor.u32 1.1754944e-38, %v993_v34 }
 0x2e3   :  { %v965_v16 = vmul.f32 %v1997_v9, %v964_v30 }
 0x2e4   :  { %v1999_v12 = vpop.eup %1998  ;;  %v951_v33 = vadd.f32 %v1995_v8, %v950_v46 }
 0x2e5   :  { %v966_v24 = vadd.f32 %v1997_v9, %v965_v16  ;;  %v983_v37 = vmul.f32 %v1999_v12, %v981_v45  ;;  %v2001_v50 = vpop.eup %2000  ;;  %vm988_vm12 = vweird.f32 %v1999_v12 }
 0x2e6   :  { %v955_v57 = vsel %vm954_vm8, %v1995_v8, %v951_v33  ;;  %v991_v8 = vand.u32 2147483647, %v981_v45  ;;  %vm989_vm14 = vmor %vm987_vm13, %vm988_vm12 }
 0x2e7   :  { %v960_v63 = vsel %vm957_vm10, %v959_v23, %v955_v57  ;;  %v970_v52 = vsel %vm969_vm9, %v1997_v9, %v966_v24  ;;  %v984_v22 = vsub.f32 1.0, %v983_v37  ;;  %v2858_v24 = vld [vmem:[#allocation9_spill] sm:$0xff] }
 0x2e8   :  { %v975_v0 = vsel %vm972_vm11, %v974_v58, %v970_v52  ;;  %v998_v36 = vmul.f32 %v2001_v50, %v960_v63  ;;  %vm992_vm15 = vcmp.eq.f32.partialorder %v991_v8, 8.507059e+37  ;;  %v2859_v8 = vld [vmem:[#allocation10_spill] sm:$0xff] }
 0x2e9   :  { %v997_v4 = vmul.f32 %v975_v0, %v2621_v6  ;;  %v985_v26 = vmul.f32 %v1999_v12, %v984_v22 }
 0x2eb   :  { %v2661_v31 = vadd.f32 %v998_v36, %v997_v4  ;;  %v986_v56 = vadd.f32 %v1999_v12, %v985_v26 }
 0x2ed   :  { %2002 = vtanh.f32 %v2661_v31  ;;  %v990_v10 = vsel %vm989_vm14, %v1999_v12, %v986_v56 }
 0x2ee   :  { %v995_v30 = vsel %vm992_vm15, %v994_v29, %v990_v10 }
 0x2f3   :  { %v2003_v9 = vpop.eup %2002 }
 0x2f4   :  { %v1001_v51 = vmul.f32 %v2003_v9, %v995_v30 }
 0x2f6   :  { %v1002_v48 = vpack.c.bf16 %v1001_v51, %v1001_v51 }
 0x2f8   :  { %1011 = vmatmul.bf16.vlgmr.msrb.gmra.mxu0 %v1002_v48  ;;  %1024 = vmatmul.bf16.vlgmr.msrb.gmra.mxu1 %v1002_v48 }
 0x2f9   :  { %1037 = vmatmul.bf16.vlgmr.msrb.gmra.mxu2 %v1002_v48  ;;  %1050 = vmatmul.bf16.vlgmr.msrb.gmra.mxu3 %v1002_v48 }
 0x2fa   :  { %1255 = vmatpush.bf16.msrb.mxu0 %v2349_v40  ;;  %1268 = vmatpush.bf16.msrb.mxu1 %v2351_v42 }
 0x2fb   :  { %1281 = vmatpush.bf16.msrb.mxu2 %v2355_v47  ;;  %1294 = vmatpush.bf16.msrb.mxu3 %v2353_v43 }
 0x2fe   :  { %1256 = vmatpush.bf16.msrb.mxu0 %v2361_v53  ;;  %1269 = vmatpush.bf16.msrb.mxu1 %v2365_v54 }
 0x2ff   :  { %1282 = vmatpush.bf16.msrb.mxu2 %v2370_v59  ;;  %1295 = vmatpush.bf16.msrb.mxu3 %v2367_v55 }
 0x302   :  { %1257 = vmatpush.bf16.msrb.mxu0 %v2373_v1  ;;  %1270 = vmatpush.bf16.msrb.mxu1 %v2377_v2 }
 0x303   :  { %1283 = vmatpush.bf16.msrb.mxu2 %v2382_v7  ;;  %1296 = vmatpush.bf16.msrb.mxu3 %v2379_v3 }
 0x306   :  { %1258 = vmatpush.bf16.msrb.mxu0 %v2385_v13  ;;  %1271 = vmatpush.bf16.msrb.mxu1 %v2389_v14 }
 0x307   :  { %1284 = vmatpush.bf16.msrb.mxu2 %v2394_v19  ;;  %1297 = vmatpush.bf16.msrb.mxu3 %v2391_v15 }
 0x30a   :  { %1259 = vmatpush.bf16.msrb.mxu0 %v2397_v25  ;;  %1272 = vmatpush.bf16.msrb.mxu1 %v2404_v27 }
 0x30b   :  { %1285 = vmatpush.bf16.msrb.mxu2 %v2409_v32  ;;  %1298 = vmatpush.bf16.msrb.mxu3 %v2406_v28 }
 0x30e   :  { %1260 = vmatpush.bf16.msrb.mxu0 %v2412_v39  ;;  %1273 = vmatpush.bf16.msrb.mxu1 %v2416_v41 }
 0x30f   :  { %1286 = vmatpush.bf16.msrb.mxu2 %v2421_v49  ;;  %1299 = vmatpush.bf16.msrb.mxu3 %v2418_v44 }
 0x312   :  { %1261 = vmatpush.bf16.msrb.mxu0 %v2424_v60  ;;  %1274 = vmatpush.bf16.msrb.mxu1 %v2428_v61 }
 0x313   :  { %1287 = vmatpush.bf16.msrb.mxu2 %v2433_v5  ;;  %1300 = vmatpush.bf16.msrb.mxu3 %v2430_v62 }
 0x316   :  { %1262 = vmatpush.bf16.msrb.mxu0 %v2436_v17  ;;  %1275 = vmatpush.bf16.msrb.mxu1 %v2440_v18 }
 0x317   :  { %1288 = vmatpush.bf16.msrb.mxu2 %v2445_v21  ;;  %1301 = vmatpush.bf16.msrb.mxu3 %v2442_v20 }
 0x375   :  { %v1012_v6 = vpop.f32.mrf.mxu0  ;;  %v1025_v45 = vpop.f32.mrf.mxu1 }
 0x376   :  { %v1013_v46 = vadd.f32 %v1012_v6, %v2518_v35  ;;  %v1026_v16 = vadd.f32 %v1025_v45, %v2857_v38 }
 0x378   :  { %v1858_v11 = vmul.f32 -1.442695, %v1013_v46  ;;  %v1859_v12 = vmul.f32 -1.442695, %v1026_v16 }
 0x37a   :  { %2004 = vpow2.f32 %v1858_v11 }
 0x37b   :  { %2006 = vpow2.f32 %v1859_v12 }
 0x37c   :  { %v1038_v33 = vpop.f32.mrf.mxu2  ;;  %v1051_v23 = vpop.f32.mrf.mxu3 }
 0x37d   :  { %v1052_v37 = vadd.f32 %v1051_v23, %v2858_v24  ;;  %v1014_v58 = vpop.f32.mrf.mxu0  ;;  %v1027_v57 = vpop.f32.mrf.mxu1  ;;  %v1039_v10 = vadd.f32 %v1038_v33, %v2859_v8 }
 0x37f   :  { %v1860_v50 = vmul.f32 -1.442695, %v1052_v37 }
 0x380   :  { %v2005_v63 = vpop.eup %2004 }
 0x381   :  { %v2007_v52 = vpop.eup %2006  ;;  %v1061_v22 = vadd.f32 1.0, %v2005_v63  ;;  %2008 = vpow2.f32 %v1860_v50 }
 0x382   :  { %v1062_v0 = vadd.f32 1.0, %v2007_v52 }
 0x383   :  { %2010 = vrcp.f32 %v1061_v22  ;;  %v1074_v6 = vand.u32 2147483648, %v1061_v22  ;;  %v1072_v16 = vand.u32 2147483647, %v1061_v22  ;;  %vm1068_vm2 = vweird.f32 %v1061_v22 }
 0x384   :  { %2012 = vrcp.f32 %v1062_v0  ;;  %v1040_v36 = vpop.f32.mrf.mxu2  ;;  %v1053_v4 = vpop.f32.mrf.mxu3  ;;  %v1089_v45 = vand.u32 2147483648, %v1062_v0  ;;  %v1087_v12 = vand.u32 2147483647, %v1062_v0  ;;  %vm1083_vm3 = vweird.f32 %v1062_v0 }
 0x385   :  { %v1075_v33 = vor.u32 1.1754944e-38, %v1074_v6  ;;  %vm1073_vm6 = vcmp.eq.f32.partialorder %v1072_v16, 8.507059e+37 }
 0x386   :  { %v1090_v50 = vor.u32 1.1754944e-38, %v1089_v45  ;;  %vm1088_vm7 = vcmp.eq.f32.partialorder %v1087_v12, 8.507059e+37 }
 0x387   :  { %v2009_v26 = vpop.eup %2008 }
 0x388   :  { %v1097_v56 = vadd.f32 1.0, %v2009_v26 }
 0x389   :  { %v2011_v34 = vpop.eup %2010 }
 0x38a   :  { %v2013_v29 = vpop.eup %2012  ;;  %v1064_v9 = vmul.f32 %v2011_v34, %v1061_v22  ;;  %2014 = vrcp.f32 %v1097_v56  ;;  %vm1069_vm0 = vweird.f32 %v2011_v34  ;;  %vm1103_vm9 = vweird.f32 %v1097_v56 }
 0x38b   :  { %v1079_v30 = vmul.f32 %v2013_v29, %v1062_v0  ;;  %2016 = vtanh.f32 %v1039_v10  ;;  %vm1084_vm1 = vweird.f32 %v2013_v29  ;;  %vm1070_vm4 = vmor %vm1068_vm2, %vm1069_vm0 }
 0x38c   :  { %v1065_v51 = vsub.f32 1.0, %v1064_v9  ;;  %vm1085_vm5 = vmor %vm1083_vm3, %vm1084_vm1 }
 0x38d   :  { %v1080_v48 = vsub.f32 1.0, %v1079_v30 }
 0x38e   :  { %v1066_v46 = vmul.f32 %v2011_v34, %v1065_v51 }
 0x38f   :  { %v1081_v11 = vmul.f32 %v2013_v29, %v1080_v48  ;;  %v1109_v48 = vand.u32 2147483648, %v1097_v56 }
 0x390   :  { %v2015_v23 = vpop.eup %2014  ;;  %v1067_v37 = vadd.f32 %v2011_v34, %v1066_v46 }
 0x391   :  { %v1082_v58 = vadd.f32 %v2013_v29, %v1081_v11  ;;  %v1099_v57 = vmul.f32 %v2015_v23, %v1097_v56  ;;  %v2017_v52 = vpop.eup %2016  ;;  %vm1104_vm8 = vweird.f32 %v2015_v23  ;;  %v1110_v45 = vor.u32 1.1754944e-38, %v1109_v48 }
 0x392   :  { %v1071_v63 = vsel %vm1070_vm4, %v2011_v34, %v1067_v37  ;;  %v1107_v34 = vand.u32 2147483647, %v1097_v56  ;;  %vm1105_vm10 = vmor %vm1103_vm9, %vm1104_vm8 }
 0x393   :  { %v1076_v36 = vsel %vm1073_vm6, %v1075_v33, %v1071_v63  ;;  %v1086_v4 = vsel %vm1085_vm5, %v2013_v29, %v1082_v58  ;;  %v1100_v26 = vsub.f32 1.0, %v1099_v57 }
 0x394   :  { %v1091_v10 = vsel %vm1088_vm7, %v1090_v50, %v1086_v4  ;;  %v1114_v9 = vmul.f32 %v2017_v52, %v1076_v36  ;;  %vm1108_vm11 = vcmp.eq.f32.partialorder %v1107_v34, 8.507059e+37 }
 0x395   :  { %v1113_v30 = vmul.f32 %v1091_v10, %v2661_v31  ;;  %v1101_v51 = vmul.f32 %v2015_v23, %v1100_v26 }
 0x397   :  { %v2701_v22 = vadd.f32 %v1114_v9, %v1113_v30  ;;  %v1102_v0 = vadd.f32 %v2015_v23, %v1101_v51 }
 0x399   :  { %2018 = vtanh.f32 %v2701_v22  ;;  %v1106_v6 = vsel %vm1105_vm10, %v2015_v23, %v1102_v0 }
 0x39a   :  { %v1111_v46 = vsel %vm1108_vm11, %v1110_v45, %v1106_v6 }
 0x39f   :  { %v2019_v29 = vpop.eup %2018 }
 0x3a0   :  { %v1117_v16 = vmul.f32 %v2019_v29, %v1111_v46 }
 0x3a2   :  { %v1118_v11 = vpack.c.bf16 %v1117_v16, %v1117_v16 }
 0x3a4   :  { %1139 = vmatmul.bf16.vlgmr.msra.gmra.mxu0 %v1118_v11  ;;  %1152 = vmatmul.bf16.vlgmr.msra.gmra.mxu1 %v1118_v11 }
 0x3a5   :  { %1165 = vmatmul.bf16.vlgmr.msra.gmra.mxu2 %v1118_v11  ;;  %1178 = vmatmul.bf16.vlgmr.msra.gmra.mxu3 %v1118_v11 }
 0x3a6   :  { %1379 = vmatpush.bf16.msra.mxu0 %v2349_v40  ;;  %1392 = vmatpush.bf16.msra.mxu1 %v2351_v42  ;;  %v1123_v40 = vrot.slane %v2518_v35, 2  ;;  %v1124_v42 = vrot.slane %v2857_v38, 2 }
 0x3a7   :  { %1405 = vmatpush.bf16.msra.mxu2 %v2355_v47  ;;  %1418 = vmatpush.bf16.msra.mxu3 %v2353_v43 }
 0x3aa   :  { %1380 = vmatpush.bf16.msra.mxu0 %v2361_v53  ;;  %1393 = vmatpush.bf16.msra.mxu1 %v2365_v54 }
 0x3ab   :  { %1406 = vmatpush.bf16.msra.mxu2 %v2370_v59  ;;  %1419 = vmatpush.bf16.msra.mxu3 %v2367_v55 }
 0x3ae   :  { %1381 = vmatpush.bf16.msra.mxu0 %v2373_v1  ;;  %1394 = vmatpush.bf16.msra.mxu1 %v2377_v2  ;;  %v1126_v1 = vrot.slane %v2858_v24, 2 }
 0x3af   :  { %1407 = vmatpush.bf16.msra.mxu2 %v2382_v7  ;;  %1420 = vmatpush.bf16.msra.mxu3 %v2379_v3 }
 0x3b2   :  { %1382 = vmatpush.bf16.msra.mxu0 %v2385_v13  ;;  %1395 = vmatpush.bf16.msra.mxu1 %v2389_v14 }
 0x3b3   :  { %1408 = vmatpush.bf16.msra.mxu2 %v2394_v19  ;;  %1421 = vmatpush.bf16.msra.mxu3 %v2391_v15 }
 0x3b6   :  { %1383 = vmatpush.bf16.msra.mxu0 %v2397_v25  ;;  %1396 = vmatpush.bf16.msra.mxu1 %v2404_v27 }
 0x3b7   :  { %1409 = vmatpush.bf16.msra.mxu2 %v2409_v32  ;;  %1422 = vmatpush.bf16.msra.mxu3 %v2406_v28 }
 0x3ba   :  { %1384 = vmatpush.bf16.msra.mxu0 %v2412_v39  ;;  %1397 = vmatpush.bf16.msra.mxu1 %v2416_v41 }
 0x3bb   :  { %1410 = vmatpush.bf16.msra.mxu2 %v2421_v49  ;;  %1423 = vmatpush.bf16.msra.mxu3 %v2418_v44  ;;  %v1125_v44 = vrot.slane %v2859_v8, 2 }
 0x3be   :  { %1385 = vmatpush.bf16.msra.mxu0 %v2424_v60  ;;  %1398 = vmatpush.bf16.msra.mxu1 %v2428_v61 }
 0x3bf   :  { %1411 = vmatpush.bf16.msra.mxu2 %v2433_v5  ;;  %1424 = vmatpush.bf16.msra.mxu3 %v2430_v62 }
 0x3c2   :  { %1386 = vmatpush.bf16.msra.mxu0 %v2436_v17  ;;  %1399 = vmatpush.bf16.msra.mxu1 %v2440_v18 }
 0x3c3   :  { %1412 = vmatpush.bf16.msra.mxu2 %v2445_v21  ;;  %1425 = vmatpush.bf16.msra.mxu3 %v2442_v20 }
 0x421   :  { %v1140_v43 = vpop.f32.mrf.mxu0  ;;  %v1153_v47 = vpop.f32.mrf.mxu1 }
 0x422   :  { %v1141_v53 = vadd.f32 %v1140_v43, %v1123_v40  ;;  %v1154_v54 = vadd.f32 %v1153_v47, %v1124_v42  ;;  %v1248_v47 = vrot.slane %v2857_v38, 4 }
 0x424   :  { %v1861_v55 = vmul.f32 -1.442695, %v1141_v53  ;;  %v1862_v59 = vmul.f32 -1.442695, %v1154_v54 }
 0x426   :  { %2020 = vpow2.f32 %v1861_v55 }
 0x427   :  { %2022 = vpow2.f32 %v1862_v59 }
 0x428   :  { %v1166_v2 = vpop.f32.mrf.mxu2  ;;  %v1179_v3 = vpop.f32.mrf.mxu3 }
 0x429   :  { %v1180_v7 = vadd.f32 %v1179_v3, %v1126_v1  ;;  %v1142_v13 = vpop.f32.mrf.mxu0  ;;  %v1155_v14 = vpop.f32.mrf.mxu1  ;;  %v1167_v61 = vadd.f32 %v1166_v2, %v1125_v44  ;;  %v1250_v3 = vrot.slane %v2858_v24, 4 }
 0x42b   :  { %v1863_v15 = vmul.f32 -1.442695, %v1180_v7 }
 0x42c   :  { %v2021_v19 = vpop.eup %2020 }
 0x42d   :  { %v2023_v25 = vpop.eup %2022  ;;  %v1189_v27 = vadd.f32 1.0, %v2021_v19  ;;  %2024 = vpow2.f32 %v1863_v15 }
 0x42e   :  { %v1190_v28 = vadd.f32 1.0, %v2023_v25 }
 0x42f   :  { %2026 = vrcp.f32 %v1189_v27  ;;  %v1202_v21 = vand.u32 2147483648, %v1189_v27  ;;  %v1200_v12 = vand.u32 2147483647, %v1189_v27  ;;  %vm1196_vm14 = vweird.f32 %v1189_v27 }
 0x430   :  { %2028 = vrcp.f32 %v1190_v28  ;;  %v1168_v32 = vpop.f32.mrf.mxu2  ;;  %v1181_v39 = vpop.f32.mrf.mxu3  ;;  %v1217_v31 = vand.u32 2147483648, %v1190_v28  ;;  %v1215_v37 = vand.u32 2147483647, %v1190_v28  ;;  %vm1211_vm15 = vweird.f32 %v1190_v28 }
 0x431   :  { %v1203_v57 = vor.u32 1.1754944e-38, %v1202_v21  ;;  %vm1201_vm2 = vcmp.eq.f32.partialorder %v1200_v12, 8.507059e+37 }
 0x432   :  { %v1218_v52 = vor.u32 1.1754944e-38, %v1217_v31  ;;  %vm1216_vm3 = vcmp.eq.f32.partialorder %v1215_v37, 8.507059e+37 }
 0x433   :  { %v2025_v41 = vpop.eup %2024 }
 0x434   :  { %v1225_v49 = vadd.f32 1.0, %v2025_v41 }
 0x435   :  { %v2027_v60 = vpop.eup %2026 }
 0x436   :  { %v2029_v62 = vpop.eup %2028  ;;  %v1192_v5 = vmul.f32 %v2027_v60, %v1189_v27  ;;  %2030 = vrcp.f32 %v1225_v49  ;;  %vm1197_vm12 = vweird.f32 %v2027_v60  ;;  %v1237_v45 = vand.u32 2147483648, %v1225_v49 }
 0x437   :  { %v1207_v17 = vmul.f32 %v2029_v62, %v1190_v28  ;;  %2032 = vtanh.f32 %v1167_v61  ;;  %vm1212_vm13 = vweird.f32 %v2029_v62  ;;  %vm1198_vm0 = vmor %vm1196_vm14, %vm1197_vm12  ;;  %vm1231_vm5 = vweird.f32 %v1225_v49 }
 0x438   :  { %v1193_v18 = vsub.f32 1.0, %v1192_v5  ;;  %vm1213_vm1 = vmor %vm1211_vm15, %vm1212_vm13  ;;  %v1235_v29 = vand.u32 2147483647, %v1225_v49  ;;  %v1238_v16 = vor.u32 1.1754944e-38, %v1237_v45 }
 0x439   :  { %v1208_v20 = vsub.f32 1.0, %v1207_v17 }
 0x43a   :  { %v1194_v56 = vmul.f32 %v2027_v60, %v1193_v18  ;;  %vm1236_vm7 = vcmp.eq.f32.partialorder %v1235_v29, 8.507059e+37 }
 0x43b   :  { %v1209_v23 = vmul.f32 %v2029_v62, %v1208_v20 }
 0x43c   :  { %v2031_v33 = vpop.eup %2030  ;;  %v1195_v58 = vadd.f32 %v2027_v60, %v1194_v56 }
 0x43d   :  { %v1210_v50 = vadd.f32 %v2029_v62, %v1209_v23  ;;  %v1227_v63 = vmul.f32 %v2031_v33, %v1225_v49  ;;  %v2033_v4 = vpop.eup %2032  ;;  %vm1232_vm4 = vweird.f32 %v2031_v33 }
 0x43e   :  { %v1199_v36 = vsel %vm1198_vm0, %v2027_v60, %v1195_v58  ;;  %vm1233_vm6 = vmor %vm1231_vm5, %vm1232_vm4  ;;  %v1249_v60 = vrot.slane %v2859_v8, 4 }
 0x43f   :  { %v1204_v26 = vsel %vm1201_vm2, %v1203_v57, %v1199_v36  ;;  %v1214_v10 = vsel %vm1213_vm1, %v2029_v62, %v1210_v50  ;;  %v1228_v9 = vsub.f32 1.0, %v1227_v63 }
 0x440   :  { %v1219_v30 = vsel %vm1216_vm3, %v1218_v52, %v1214_v10  ;;  %v1242_v51 = vmul.f32 %v2033_v4, %v1204_v26 }
 0x441   :  { %v1241_v0 = vmul.f32 %v1219_v30, %v2701_v22  ;;  %v1229_v48 = vmul.f32 %v2031_v33, %v1228_v9  ;;  %v1247_v22 = vrot.slane %v2518_v35, 4 }
 0x443   :  { %v2741_v34 = vadd.f32 %v1242_v51, %v1241_v0  ;;  %v1230_v6 = vadd.f32 %v2031_v33, %v1229_v48 }
 0x445   :  { %2034 = vtanh.f32 %v2741_v34  ;;  %v1234_v46 = vsel %vm1233_vm6, %v2031_v33, %v1230_v6 }
 0x446   :  { %v1239_v40 = vsel %vm1236_vm7, %v1238_v16, %v1234_v46 }
 0x44b   :  { %v2035_v11 = vpop.eup %2034 }
 0x44c   :  { %v1245_v42 = vmul.f32 %v2035_v11, %v1239_v40 }
 0x44e   :  { %v1246_v43 = vpack.c.bf16 %v1245_v42, %v1245_v42 }
 0x450   :  { %1263 = vmatmul.bf16.vlgmr.msrb.gmra.mxu0 %v1246_v43  ;;  %1276 = vmatmul.bf16.vlgmr.msrb.gmra.mxu1 %v1246_v43 }
 0x451   :  { %1289 = vmatmul.bf16.vlgmr.msrb.gmra.mxu2 %v1246_v43  ;;  %1302 = vmatmul.bf16.vlgmr.msrb.gmra.mxu3 %v1246_v43 }
 0x4cd   :  { %v1264_v53 = vpop.f32.mrf.mxu0  ;;  %v1277_v54 = vpop.f32.mrf.mxu1 }
 0x4ce   :  { %v1265_v55 = vadd.f32 %v1264_v53, %v1247_v22  ;;  %v1278_v59 = vadd.f32 %v1277_v54, %v1248_v47  ;;  %v1513_v54 = vld [vmem:[%s2849_s4 + $0x70] sm:$0xff] }
 0x4d0   :  { %v1864_v1 = vmul.f32 -1.442695, %v1265_v55  ;;  %v1865_v2 = vmul.f32 -1.442695, %v1278_v59  ;;  %v1512_v55 = vld [vmem:[%s2849_s4 + $0x68] sm:$0xff]  ;;  %v1511_v59 = vld [vmem:[%s2849_s4 + $0x60] sm:$0xff] }
 0x4d2   :  { %2036 = vpow2.f32 %v1864_v1  ;;  %v1510_v1 = vld [vmem:[%s2849_s4 + $0x58] sm:$0xff] }
 0x4d3   :  { %2038 = vpow2.f32 %v1865_v2  ;;  %v1509_v2 = vld [vmem:[%s2849_s4 + $0x50] sm:$0xff] }
 0x4d4   :  { %v1290_v7 = vpop.f32.mrf.mxu2  ;;  %v1303_v13 = vpop.f32.mrf.mxu3 }
 0x4d5   :  { %v1304_v14 = vadd.f32 %v1303_v13, %v1250_v3  ;;  %v1266_v15 = vpop.f32.mrf.mxu0  ;;  %v1279_v19 = vpop.f32.mrf.mxu1  ;;  %v1291_v5 = vadd.f32 %v1290_v7, %v1249_v60  ;;  %v1371_v3 = vrot.slane %v2518_v35, 6  ;;  %v1372_v7 = vrot.slane %v2857_v38, 6  ;;  %v1506_v35 = vld [vmem:[%s2849_s4 + $0x38] sm:$0xff]  ;;  %v1505_v38 = vld [vmem:[%s2849_s4 + $0x30] sm:$0xff] }
 0x4d6   :  { %v1508_v15 = vld [vmem:[%s2849_s4 + $0x48] sm:$0xff] }
 0x4d7   :  { %v1866_v25 = vmul.f32 -1.442695, %v1304_v14 }
 0x4d8   :  { %v2037_v27 = vpop.eup %2036 }
 0x4d9   :  { %v2039_v28 = vpop.eup %2038  ;;  %v1313_v32 = vadd.f32 1.0, %v2037_v27  ;;  %2040 = vpow2.f32 %v1866_v25  ;;  %v1507_v27 = vld [vmem:[%s2849_s4 + $0x40] sm:$0xff] }
 0x4da   :  { %v1314_v39 = vadd.f32 1.0, %v2039_v28 }
 0x4db   :  { %2042 = vrcp.f32 %v1313_v32  ;;  %v1326_v56 = vand.u32 2147483648, %v1313_v32  ;;  %v1324_v37 = vand.u32 2147483647, %v1313_v32  ;;  %vm1320_vm10 = vweird.f32 %v1313_v32 }
 0x4dc   :  { %2044 = vrcp.f32 %v1314_v39  ;;  %v1292_v41 = vpop.f32.mrf.mxu2  ;;  %v1305_v44 = vpop.f32.mrf.mxu3  ;;  %v1341_v12 = vand.u32 2147483648, %v1314_v39  ;;  %v1339_v58 = vand.u32 2147483647, %v1314_v39  ;;  %vm1335_vm11 = vweird.f32 %v1314_v39 }
 0x4dd   :  { %v1327_v63 = vor.u32 1.1754944e-38, %v1326_v56  ;;  %vm1325_vm14 = vcmp.eq.f32.partialorder %v1324_v37, 8.507059e+37  ;;  %v1504_v41 = vld [vmem:[%s2849_s4 + $0x28] sm:$0xff] }
 0x4de   :  { %v1342_v4 = vor.u32 1.1754944e-38, %v1341_v12  ;;  %vm1340_vm15 = vcmp.eq.f32.partialorder %v1339_v58, 8.507059e+37  ;;  %v1500_v12 = vld [vmem:[%s2849_s4 + $0x8] sm:$0xff] }
 0x4df   :  { %v2041_v49 = vpop.eup %2040 }
 0x4e0   :  { %v1349_v61 = vadd.f32 1.0, %v2041_v49 }
 0x4e1   :  { %v2043_v62 = vpop.eup %2042 }
 0x4e2   :  { %v2045_v17 = vpop.eup %2044  ;;  %v1316_v18 = vmul.f32 %v2043_v62, %v1313_v32  ;;  %2046 = vrcp.f32 %v1349_v61  ;;  %vm1321_vm8 = vweird.f32 %v2043_v62  ;;  %v1361_v16 = vand.u32 2147483648, %v1349_v61 }
 0x4e3   :  { %v1331_v20 = vmul.f32 %v2045_v17, %v1314_v39  ;;  %2048 = vtanh.f32 %v1291_v5  ;;  %vm1336_vm9 = vweird.f32 %v2045_v17  ;;  %vm1322_vm12 = vmor %vm1320_vm10, %vm1321_vm8  ;;  %vm1355_vm1 = vweird.f32 %v1349_v61  ;;  %v1503_v5 = vld [vmem:[%s2849_s4 + $0x20] sm:$0xff] }
 0x4e4   :  { %v1317_v21 = vsub.f32 1.0, %v1316_v18  ;;  %vm1337_vm13 = vmor %vm1335_vm11, %vm1336_vm9  ;;  %v1359_v11 = vand.u32 2147483647, %v1349_v61  ;;  %v1362_v42 = vor.u32 1.1754944e-38, %v1361_v16  ;;  %v1374_v39 = vrot.slane %v2858_v24, 6  ;;  %v1502_v24 = vld [vmem:[%s2849_s4 + $0x18] sm:$0xff] }
 0x4e5   :  { %v1332_v31 = vsub.f32 1.0, %v1331_v20  ;;  %v1518_v16 = vld [vmem:[%s2849_s4 + $0x98] sm:$0xff] }
 0x4e6   :  { %v1318_v23 = vmul.f32 %v2043_v62, %v1317_v21  ;;  %vm1360_vm3 = vcmp.eq.f32.partialorder %v1359_v11, 8.507059e+37 }
 0x4e7   :  { %v1333_v33 = vmul.f32 %v2045_v17, %v1332_v31  ;;  %v1501_v31 = vld [vmem:[%s2849_s4 + $0x10] sm:$0xff] }
 0x4e8   :  { %v2047_v57 = vpop.eup %2046  ;;  %v1319_v50 = vadd.f32 %v2043_v62, %v1318_v23 }
 0x4e9   :  { %v1334_v52 = vadd.f32 %v2045_v17, %v1333_v33  ;;  %v1351_v36 = vmul.f32 %v2047_v57, %v1349_v61  ;;  %v2049_v10 = vpop.eup %2048  ;;  %vm1356_vm0 = vweird.f32 %v2047_v57  ;;  %v1499_v33 = vld [vmem:[%s2849_s4] sm:$0xff] }
 0x4ea   :  { %v1323_v26 = vsel %vm1322_vm12, %v2043_v62, %v1319_v50  ;;  %vm1357_vm2 = vmor %vm1355_vm1, %vm1356_vm0  ;;  %vm1543_vm0 = vcmask 523264   ;;  %vm1567_vm1 = vcmask 8192  }
 0x4eb   :  { %v1328_v9 = vsel %vm1325_vm14, %v1327_v63, %v1323_v26  ;;  %v1338_v30 = vsel %vm1337_vm13, %v2045_v17, %v1334_v52  ;;  %v1352_v51 = vsub.f32 1.0, %v1351_v36  ;;  %v1522_v63 = vld [vmem:[%s2849_s4 + $0xb8] sm:$0xff]  ;;  %v1521_v52 = vld [vmem:[%s2849_s4 + $0xb0] sm:$0xff] }
 0x4ec   :  { %v1343_v0 = vsel %vm1340_vm15, %v1342_v4, %v1338_v30  ;;  %v1366_v48 = vmul.f32 %v2049_v10, %v1328_v9  ;;  %1555 = vmatpush.msrb.mxu1 %v1522_v63 }
 0x4ed   :  { %v1365_v6 = vmul.f32 %v1343_v0, %v2741_v34  ;;  %v1353_v45 = vmul.f32 %v2047_v57, %v1352_v51  ;;  %v1514_v34 = vld [vmem:[%s2849_s4 + $0x78] sm:$0xff]  ;;  %v1519_v51 = vld [vmem:[%s2849_s4 + $0xa0] sm:$0xff] }
 0x4ee   :  { %1523 = vmatpush.msrb.mxu0 %v1514_v34  ;;  %1556 = vmatpush.msrb.mxu1 %v1521_v52 }
 0x4ef   :  { %v2749_v29 = vadd.f32 %v1366_v48, %v1365_v6  ;;  %v1354_v46 = vadd.f32 %v2047_v57, %v1353_v45 }
 0x4f0   :  { %1524 = vmatpush.msrb.mxu0 %v1513_v54 }
 0x4f1   :  { %2050 = vtanh.f32 %v2749_v29  ;;  %v1358_v40 = vsel %vm1357_vm2, %v2047_v57, %v1354_v46  ;;  %v1373_v57 = vrot.slane %v2859_v8, 6  ;;  %v1520_v8 = vld [vmem:[%s2849_s4 + $0xa8] sm:$0xff] }
 0x4f2   :  { %v1363_v22 = vsel %vm1360_vm3, %v1362_v42, %v1358_v40  ;;  %1525 = vmatpush.msrb.mxu0 %v1512_v55  ;;  %1557 = vmatpush.msrb.mxu1 %v1520_v8 }
 0x4f4   :  { %1526 = vmatpush.msrb.mxu0 %v1511_v59  ;;  %1558 = vmatpush.msrb.mxu1 %v1519_v51  ;;  %v1516_v59 = vld [vmem:[%s2849_s4 + $0x88] sm:$0xff] }
 0x4f6   :  { %1527 = vmatpush.msrb.mxu0 %v1510_v1  ;;  %1559 = vmatpush.msrb.mxu1 %v1518_v16 }
 0x4f7   :  { %v2051_v43 = vpop.eup %2050 }
 0x4f8   :  { %v1369_v47 = vmul.f32 %v2051_v43, %v1363_v22  ;;  %1528 = vmatpush.msrb.mxu0 %v1509_v2  ;;  %v1517_v22 = vld [vmem:[%s2849_s4 + $0x90] sm:$0xff] }
 0x4f9   :  { %1560 = vmatpush.msrb.mxu1 %v1517_v22 }
 0x4fa   :  { %v1370_v53 = vpack.c.bf16 %v1369_v47, %v1369_v47  ;;  %1529 = vmatpush.msrb.mxu0 %v1508_v15 }
 0x4fb   :  { %1561 = vmatpush.msrb.mxu1 %v1516_v59 }
 0x4fc   :  { %1387 = vmatmul.bf16.vlgmr.msra.gmra.mxu0 %v1370_v53  ;;  %1400 = vmatmul.bf16.vlgmr.msra.gmra.mxu1 %v1370_v53 }
 0x4fd   :  { %1413 = vmatmul.bf16.vlgmr.msra.gmra.mxu2 %v1370_v53  ;;  %1426 = vmatmul.bf16.vlgmr.msra.gmra.mxu3 %v1370_v53 }
 0x4fe   :  { %1530 = vmatpush.msrb.mxu0 %v1507_v27 }
 0x500   :  { %1531 = vmatpush.msrb.mxu0 %v1506_v35 }
 0x502   :  { %1532 = vmatpush.msrb.mxu0 %v1505_v38 }
 0x504   :  { %1533 = vmatpush.msrb.mxu0 %v1504_v41 }
 0x506   :  { %1534 = vmatpush.msrb.mxu0 %v1503_v5 }
 0x508   :  { %1535 = vmatpush.msrb.mxu0 %v1502_v24  ;;  %v73_v24 = vld [vmem:[%s2848_s3 + $0x6] ss:$0 sm:$0xff] }
 0x50a   :  { %1536 = vmatpush.msrb.mxu0 %v1501_v31 }
 0x50c   :  { %1537 = vmatpush.msrb.mxu0 %v1500_v12 }
 0x50e   :  { %1538 = vmatpush.msrb.mxu0 %v1499_v33 }
 0x579   :  { %v1388_v13 = vpop.f32.mrf.mxu0  ;;  %v1401_v14 = vpop.f32.mrf.mxu1 }
 0x57a   :  { %v1389_v19 = vadd.f32 %v1388_v13, %v1371_v3  ;;  %v1402_v25 = vadd.f32 %v1401_v14, %v1372_v7 }
 0x57c   :  { %v1867_v28 = vmul.f32 -1.442695, %v1389_v19  ;;  %v1868_v32 = vmul.f32 -1.442695, %v1402_v25 }
 0x57e   :  { %2052 = vpow2.f32 %v1867_v28 }
 0x57f   :  { %2054 = vpow2.f32 %v1868_v32 }
 0x580   :  { %v1414_v44 = vpop.f32.mrf.mxu2  ;;  %v1427_v49 = vpop.f32.mrf.mxu3 }
 0x581   :  { %v1428_v60 = vadd.f32 %v1427_v49, %v1374_v39  ;;  %v1390_v61 = vpop.f32.mrf.mxu0  ;;  %v1403_v62 = vpop.f32.mrf.mxu1  ;;  %v1415_v4 = vadd.f32 %v1414_v44, %v1373_v57 }
 0x582   :  { %v1515_v61 = vld [vmem:[%s2849_s4 + $0x80] sm:$0xff] }
 0x583   :  { %v1869_v17 = vmul.f32 -1.442695, %v1428_v60  ;;  %1562 = vmatpush.msrb.mxu1 %v1515_v61  ;;  %v72_v62 = vld [vmem:[%s2848_s3 + $0x5] ss:$0 sm:$0xff] }
 0x584   :  { %v2053_v18 = vpop.eup %2052 }
 0x585   :  { %v2055_v20 = vpop.eup %2054  ;;  %v1437_v21 = vadd.f32 1.0, %v2053_v18  ;;  %2056 = vpow2.f32 %v1869_v17 }
 0x586   :  { %v1438_v56 = vadd.f32 1.0, %v2055_v20 }
 0x587   :  { %2058 = vrcp.f32 %v1437_v21  ;;  %v1450_v48 = vand.u32 2147483648, %v1437_v21  ;;  %v1448_v46 = vand.u32 2147483647, %v1437_v21  ;;  %vm1444_vm6 = vweird.f32 %v1437_v21 }
 0x588   :  { %2060 = vrcp.f32 %v1438_v56  ;;  %v1416_v23 = vpop.f32.mrf.mxu2  ;;  %v1429_v37 = vpop.f32.mrf.mxu3  ;;  %v1465_v6 = vand.u32 2147483648, %v1438_v56  ;;  %v1463_v40 = vand.u32 2147483647, %v1438_v56  ;;  %vm1459_vm7 = vweird.f32 %v1438_v56 }
 0x589   :  { %v1451_v47 = vor.u32 1.1754944e-38, %v1450_v48  ;;  %vm1449_vm10 = vcmp.eq.f32.partialorder %v1448_v46, 8.507059e+37 }
 0x58a   :  { %v1466_v54 = vor.u32 1.1754944e-38, %v1465_v6  ;;  %vm1464_vm11 = vcmp.eq.f32.partialorder %v1463_v40, 8.507059e+37 }
 0x58b   :  { %v2057_v58 = vpop.eup %2056 }
 0x58c   :  { %v2804_v50 = vadd.f32 1.0, %v2057_v58 }
 0x58d   :  { %v2059_v36 = vpop.eup %2058 }
 0x58e   :  { %v2061_v26 = vpop.eup %2060  ;;  %v1440_v10 = vmul.f32 %v2059_v36, %v1437_v21  ;;  %2062 = vrcp.f32 %v2804_v50  ;;  %vm1445_vm4 = vweird.f32 %v2059_v36  ;;  %v1485_v28 = vand.u32 2147483648, %v2804_v50 }
 0x58f   :  { %v1455_v9 = vmul.f32 %v2061_v26, %v1438_v56  ;;  %2064 = vtanh.f32 %v1415_v4  ;;  %vm1460_vm5 = vweird.f32 %v2061_v26  ;;  %vm1446_vm8 = vmor %vm1444_vm6, %vm1445_vm4  ;;  %vm1479_vm13 = vweird.f32 %v2804_v50 }
 0x590   :  { %v1441_v30 = vsub.f32 1.0, %v1440_v10  ;;  %vm1461_vm9 = vmor %vm1459_vm7, %vm1460_vm5  ;;  %v1483_v32 = vand.u32 2147483647, %v2804_v50  ;;  %v1486_v38 = vor.u32 1.1754944e-38, %v1485_v28 }
 0x591   :  { %v1456_v0 = vsub.f32 1.0, %v1455_v9 }
 0x592   :  { %v1442_v45 = vmul.f32 %v2059_v36, %v1441_v30  ;;  %vm1484_vm15 = vcmp.eq.f32.partialorder %v1483_v32, 8.507059e+37 }
 0x593   :  { %v1457_v11 = vmul.f32 %v2061_v26, %v1456_v0 }
 0x594   :  { %v2063_v42 = vpop.eup %2062  ;;  %v1443_v43 = vadd.f32 %v2059_v36, %v1442_v45 }
 0x595   :  { %v1458_v53 = vadd.f32 %v2061_v26, %v1457_v11  ;;  %v1475_v34 = vmul.f32 %v2063_v42, %v2804_v50  ;;  %v2065_v1 = vpop.eup %2064  ;;  %vm1480_vm12 = vweird.f32 %v2063_v42 }
 0x596   :  { %v1447_v55 = vsel %vm1446_vm8, %v2059_v36, %v1443_v43  ;;  %vm1481_vm14 = vmor %vm1479_vm13, %vm1480_vm12 }
 0x597   :  { %v1452_v2 = vsel %vm1449_vm10, %v1451_v47, %v1447_v55  ;;  %v1462_v3 = vsel %vm1461_vm9, %v2061_v26, %v1458_v53  ;;  %v1476_v7 = vsub.f32 1.0, %v1475_v34 }
 0x598   :  { %v1467_v13 = vsel %vm1464_vm11, %v1466_v54, %v1462_v3  ;;  %v1490_v14 = vmul.f32 %v2065_v1, %v1452_v2 }
 0x599   :  { %v1489_v15 = vmul.f32 %v1467_v13, %v2749_v29  ;;  %v1477_v19 = vmul.f32 %v2063_v42, %v1476_v7 }
 0x59b   :  { %v1491_v25 = vadd.f32 %v1490_v14, %v1489_v15  ;;  %v1478_v27 = vadd.f32 %v2063_v42, %v1477_v19 }
 0x59d   :  { %2066 = vtanh.f32 %v1491_v25  ;;  %v1482_v35 = vsel %vm1481_vm14, %v2063_v42, %v1478_v27 }
 0x59e   :  { %v1487_v41 = vsel %vm1484_vm15, %v1486_v38, %v1482_v35 }
 0x5a3   :  { %v2067_v39 = vpop.eup %2066 }
 0x5a4   :  { %v1493_v44 = vmul.f32 %v2067_v39, %v1487_v41 }
 0x5a6   :  { %v1495_v29 = vrot.slane %v1493_v44, 1 }
 0x5a8   :  { %v1497_v49 = vsub.f32 %v1493_v44, %v1495_v29 }
 0x5aa   :  { %v1498_v60 = vand.u32 2147483647, %v1497_v49 }
 0x5ac   :  { %1539 = vmatmul.f32.vlgmr.msrb.gmra.mxu0 %v1498_v60 }
 0x629   :  { %v1540_v5 = vpop.f32.mrf.mxu0 }
 0x62a   :  { %v1541_v17 = vadd.f32 %v1540_v5, %v72_v62 }
 0x62c   :  { %1870 = vmatmul.msk.f32.vlgmr.msrb.gmra.mxu1 %vm1543_vm0, %v1541_v17 }
 0x6a9   :  { %v1564_v18 = vpop.f32.mrf.mxu1 }
 0x6aa   :  { %v1565_v20 = vadd.f32 %v1564_v18, %v73_v24 }
 0x6ac   :  { %1568 = vst.msk [vmem:[#allocation5] sm:$0x1] %vm1567_vm1, %v1565_v20 }
 0x6ad   :  { %1579 = dma.vmem_to_hbm [thread:$0]  %s1575_s26, 16, %s1577_s29, [#allocation4]  }
 0x6ae   :  { %2118 = dma.done.wait [#allocation4], 16  }
 0x6af   :  { %2119 = vsyncadd [#allocation4], 4294967280 }
 0x6b0   :  { %1584 = vsyncpa [#allocation3], 1 }
 0x6b1   :  { %1585 = vsyncpa [#allocation4], 1 }

</bundles_post_ra>
